<compile_context>
chip_gen: v6e
topology: v6e:2x2x1
jax: 0.10.0
libtpu: 0.0.40
codegen_flags: <defaults>
</compile_context>

<pallas_src>
import math
from functools import partial

import numpy as np
import jax
import jax.numpy as jnp
from jax.experimental import pallas as pl
from jax.experimental.pallas import tpu as pltpu


def _layernorm(x, gamma, beta, eps=1e-5):
    mu = jnp.mean(x, axis=-1, keepdims=True)
    xc = x - mu
    var = jnp.mean(xc * xc, axis=-1, keepdims=True)
    return xc * jax.lax.rsqrt(var + eps) * gamma + beta


def _encoder_layer_kernel(B, S, nhead,
                          x_ref,
                          wq_ref, wk_ref, wv_ref,
                          bq_ref, bk_ref, bv_ref,
                          wo_ref, bo_ref,
                          w1T_ref, b1_ref, w2T_ref, b2_ref,
                          g1_ref, be1_ref, g2_ref, be2_ref,
                          o_ref):
    T, D = x_ref.shape              # T = B * S (flattened rows -> M=16 fed to the MXU)
    G = B * nhead                   # (batch, head) fused into one dot_general batch axis
    cdt = wq_ref.dtype              # MXU operand dtype (f32, or bf16 on v6e/v7x)

    x = x_ref[...]                  # (T, D) f32

    # ---- pre-norm 1 + multi-head self-attention ----
    h = _layernorm(x, g1_ref[...], be1_ref[...])                    # f32 elementwise

    # Lift to (G, S, D) with leading-dim reshapes / broadcast only: no lane-splitting
    # reshapes, no XLU transposes, no concatenates.
    hg = jnp.broadcast_to(h.reshape(B, 1, S, D), (B, nhead, S, D)).reshape(G, S, D)
    hg = hg.astype(cdt)

    # Per-(batch, head) projections as batched MXU matmuls (scale pre-folded into wq/bq).
    q = jnp.einsum('gsd,gde->gse', hg, wq_ref[...],
                   preferred_element_type=jnp.float32) + bq_ref[...]
    k = jnp.einsum('gsd,gde->gse', hg, wk_ref[...],
                   preferred_element_type=jnp.float32) + bk_ref[...]
    v = jnp.einsum('gsd,gde->gse', hg, wv_ref[...],
                   preferred_element_type=jnp.float32) + bv_ref[...]

    s = jnp.einsum('gqe,gke->gqk', q.astype(cdt), k.astype(cdt),
                   preferred_element_type=jnp.float32)              # (G, S, S)
    s = s - jnp.max(s, axis=-1, keepdims=True)
    p = jnp.exp(s)                                                  # f32 softmax math
    p = p * pl.reciprocal(jnp.sum(p, axis=-1, keepdims=True), approx=True)

    ctx = jnp.einsum('gqk,gke->gqe', p.astype(cdt), v.astype(cdt),
                     preferred_element_type=jnp.float32)            # (G, S, hd)

    # Head recombination folded into the output projection: contract each head with
    # its (hd, D) slice of W_o and sum partials over heads.
    part = jnp.einsum('gse,ged->gsd', ctx.astype(cdt), wo_ref[...],
                      preferred_element_type=jnp.float32)           # (G, S, D)
    attn = part.reshape(B, nhead, S, D).sum(axis=1).reshape(T, D) + bo_ref[...]

    x1 = x + attn                   # residual 1 (dropout1 = identity)

    # ---- pre-norm 2 + feed-forward (single M=T matmuls) ----
    h2 = _layernorm(x1, g2_ref[...], be2_ref[...])
    f = jnp.dot(h2.astype(cdt), w1T_ref[...],
                preferred_element_type=jnp.float32) + b1_ref[...]
    f = jnp.maximum(f, 0.0)
    f = jnp.dot(f.astype(cdt), w2T_ref[...],
                preferred_element_type=jnp.float32) + b2_ref[...]

    o_ref[...] = (x1 + f).astype(o_ref.dtype)   # residual 2 (dropout2 = identity)
    # TODO(synk): attn_mask / key_padding_mask / train-mode dropout are not exercised by
    # this synthetic forward and are omitted (eval-mode identity).


def transformer_encoder_layer(src, params, nhead, *, compute_dtype=jnp.float32):
    """compute_dtype=jnp.bfloat16 halves MXU operand width / weight VMEM on v6e/v7x;
    LayerNorm & softmax arithmetic stays f32 (keeps v5e VPU/EUP happy)."""
    B, S, D = src.shape
    hd = D // nhead
    scale = 1.0 / math.sqrt(hd)

    wq, wk, wv = jnp.split(params["in_proj_w"], 3, axis=0)          # (D, D) each (out, in)
    bq, bk, bv = jnp.split(params["in_proj_b"], 3, axis=0)          # (D,) each

    def row(v):                                   # 1D -> (1, N) VMEM-friendly layout
        return v.reshape(1, -1).astype(jnp.float32)

    def head_w(w, s=1.0):
        # x @ w.T with each head's output columns stacked on a leading batch axis,
        # tiled over B so (batch, head) is a single dot_general batch dim.
        wt = (w.T * s).reshape(D, nhead, hd).transpose(1, 0, 2)     # (nhead, D, hd)
        return jnp.tile(wt, (B, 1, 1)).astype(compute_dtype)        # (B*nhead, D, hd)

    def head_b(b, s=1.0):
        bt = (b * s).reshape(nhead, 1, hd)
        return jnp.tile(bt, (B, 1, 1)).astype(jnp.float32)          # (B*nhead, 1, hd)

    wo = params["out_proj_w"].T.reshape(nhead, hd, D)               # rows = head-major inputs
    wo_g = jnp.tile(wo, (B, 1, 1)).astype(compute_dtype)            # (B*nhead, hd, D)

    args = (
        src.reshape(B * S, D).astype(jnp.float32),
        head_w(wq, scale), head_w(wk), head_w(wv),
        head_b(bq, scale), head_b(bk), head_b(bv),
        wo_g, row(params["out_proj_b"]),
        params["w1"].T.astype(compute_dtype), row(params["b1"]),
        params["w2"].T.astype(compute_dtype), row(params["b2"]),
        row(params["ln1_g"]), row(params["ln1_b"]),
        row(params["ln2_g"]), row(params["ln2_b"]),
    )

    # Whole-array-in-VMEM, grid-less call: everything (~20 KB) fits trivially.
    # Note: at realistic (D, FF) sizes on v7x (64 MiB VMEM), the FFN weights would
    # instead need a K-tiled grid/BlockSpec (and/or bf16 storage) rather than
    # whole-array residency.
    vmem = pl.BlockSpec(memory_space=pltpu.MemorySpace.VMEM)
    out = pl.pallas_call(
        partial(_encoder_layer_kernel, B, S, nhead),
        out_shape=jax.ShapeDtypeStruct((B * S, D), jnp.float32),
        in_specs=[vmem] * len(args),
        out_specs=vmem,
    )(*args)
    return out.reshape(B, S, D)


def _reference(src, params, nhead):
    B, S, D = src.shape
    head_dim = D // nhead

    def ln(x, g, b, eps=1e-5):
        mu = x.mean(-1, keepdims=True)
        var = ((x - mu) ** 2).mean(-1, keepdims=True)
        return (x - mu) / jnp.sqrt(var + eps) * g + b

    wq, wk, wv = jnp.split(params["in_proj_w"], 3, axis=0)
    bq, bk, bv = jnp.split(params["in_proj_b"], 3, axis=0)

    h = ln(src, params["ln1_g"], params["ln1_b"])
    q = h @ wq.T + bq
    k = h @ wk.T + bk
    v = h @ wv.T + bv
    q = q.reshape(B, S, nhead, head_dim).transpose(0, 2, 1, 3)
    k = k.reshape(B, S, nhead, head_dim).transpose(0, 2, 1, 3)
    v = v.reshape(B, S, nhead, head_dim).transpose(0, 2, 1, 3)
    s = jnp.einsum("bhqd,bhkd->bhqk", q, k) / math.sqrt(head_dim)
    p = jax.nn.softmax(s, axis=-1)
    a = jnp.einsum("bhqk,bhkd->bhqd", p, v).transpose(0, 2, 1, 3).reshape(B, S, D)
    a = a @ params["out_proj_w"].T + params["out_proj_b"]
    x = src + a
    h2 = ln(x, params["ln2_g"], params["ln2_b"])
    f = jax.nn.relu(h2 @ params["w1"].T + params["b1"]) @ params["w2"].T + params["b2"]
    return x + f


if __name__ == "__main__":
    B, S, D, NHEAD, FF = 2, 8, 32, 4, 64

    key = jax.random.PRNGKey(0)
    keys = jax.random.split(key, 8)
    params = {
        "in_proj_w": 0.1 * jax.random.normal(keys[0], (3 * D, D), jnp.float32),
        "in_proj_b": 0.1 * jax.random.normal(keys[1], (3 * D,), jnp.float32),
        "out_proj_w": 0.1 * jax.random.normal(keys[2], (D, D), jnp.float32),
        "out_proj_b": jnp.zeros((D,), jnp.float32),
        "w1": 0.1 * jax.random.normal(keys[3], (FF, D), jnp.float32),
        "b1": 0.1 * jax.random.normal(keys[4], (FF,), jnp.float32),
        "w2": 0.1 * jax.random.normal(keys[5], (D, FF), jnp.float32),
        "b2": 0.1 * jax.random.normal(keys[6], (D,), jnp.float32),
        "ln1_g": jnp.ones((D,), jnp.float32),
        "ln1_b": jnp.zeros((D,), jnp.float32),
        "ln2_g": jnp.ones((D,), jnp.float32),
        "ln2_b": jnp.zeros((D,), jnp.float32),
    }

    src = jax.random.normal(keys[7], (B, S, D), jnp.float32)

    out = jax.block_until_ready(transformer_encoder_layer(src, params, NHEAD))
    ref = jax.block_until_ready(_reference(src, params, NHEAD))

    assert out.shape == (B, S, D)
    # Tolerance relaxed slightly vs. pure-f32 (5e-3) to cover the approximate EUP
    # reciprocal used for the softmax denominator.
    np.testing.assert_allclose(np.asarray(out), np.asarray(ref), rtol=5e-3, atol=5e-3)

    print("KERNEL_OK")
</pallas_src>

<mosaic_0001>
module attributes {stable_mosaic.version = 11 : i64} {
  func.func @_encoder_layer_kernel(%arg0: memref<16x32xf32, #tpu.memory_space<vmem>>, %arg1: memref<8x32x8xf32, #tpu.memory_space<vmem>>, %arg2: memref<8x32x8xf32, #tpu.memory_space<vmem>>, %arg3: memref<8x32x8xf32, #tpu.memory_space<vmem>>, %arg4: memref<8x1x8xf32, #tpu.memory_space<vmem>>, %arg5: memref<8x1x8xf32, #tpu.memory_space<vmem>>, %arg6: memref<8x1x8xf32, #tpu.memory_space<vmem>>, %arg7: memref<8x8x32xf32, #tpu.memory_space<vmem>>, %arg8: memref<1x32xf32, #tpu.memory_space<vmem>>, %arg9: memref<32x64xf32, #tpu.memory_space<vmem>>, %arg10: memref<1x64xf32, #tpu.memory_space<vmem>>, %arg11: memref<64x32xf32, #tpu.memory_space<vmem>>, %arg12: memref<1x32xf32, #tpu.memory_space<vmem>>, %arg13: memref<1x32xf32, #tpu.memory_space<vmem>>, %arg14: memref<1x32xf32, #tpu.memory_space<vmem>>, %arg15: memref<1x32xf32, #tpu.memory_space<vmem>>, %arg16: memref<1x32xf32, #tpu.memory_space<vmem>>, %arg17: memref<16x32xf32, #tpu.memory_space<vmem>>) attributes {dimension_semantics = [], scalar_prefetch = 0 : i64, scratch_operands = 0 : i64, tpu.core_type = #tpu.core_type<tc>} {
    %c0 = arith.constant 0 : index
    %c0_0 = arith.constant 0 : index
    %0 = vector.load %arg0[%c0, %c0_0] : memref<16x32xf32, #tpu.memory_space<vmem>>, vector<16x32xf32>
    %c0_1 = arith.constant 0 : index
    %c0_2 = arith.constant 0 : index
    %1 = vector.load %arg13[%c0_1, %c0_2] : memref<1x32xf32, #tpu.memory_space<vmem>>, vector<1x32xf32>
    %c0_3 = arith.constant 0 : index
    %c0_4 = arith.constant 0 : index
    %2 = vector.load %arg14[%c0_3, %c0_4] : memref<1x32xf32, #tpu.memory_space<vmem>>, vector<1x32xf32>
    %cst = arith.constant dense<0.000000e+00> : vector<16xf32>
    %3 = vector.multi_reduction <add>, %0, %cst [1] : vector<16x32xf32> to vector<16xf32>
    %4 = vector.shape_cast %3 : vector<16xf32> to vector<16x1xf32>
    %cst_5 = arith.constant 3.200000e+01 : f32
    %5 = vector.broadcast %cst_5 : f32 to vector<16x1xf32>
    %6 = arith.divf %4, %5 : vector<16x1xf32>
    %7 = vector.broadcast %6 : vector<16x1xf32> to vector<16x32xf32>
    %8 = arith.subf %0, %7 : vector<16x32xf32>
    %9 = arith.mulf %8, %8 : vector<16x32xf32>
    %cst_6 = arith.constant dense<0.000000e+00> : vector<16xf32>
    %10 = vector.multi_reduction <add>, %9, %cst_6 [1] : vector<16x32xf32> to vector<16xf32>
    %11 = vector.shape_cast %10 : vector<16xf32> to vector<16x1xf32>
    %cst_7 = arith.constant 3.200000e+01 : f32
    %12 = vector.broadcast %cst_7 : f32 to vector<16x1xf32>
    %13 = arith.divf %11, %12 : vector<16x1xf32>
    %cst_8 = arith.constant 9.99999974E-6 : f32
    %14 = vector.broadcast %cst_8 : f32 to vector<16x1xf32>
    %15 = arith.addf %13, %14 : vector<16x1xf32>
    %16 = math.rsqrt %15 : vector<16x1xf32>
    %17 = vector.broadcast %16 : vector<16x1xf32> to vector<16x32xf32>
    %18 = arith.mulf %8, %17 : vector<16x32xf32>
    %19 = vector.broadcast %1 : vector<1x32xf32> to vector<16x32xf32>
    %20 = arith.mulf %18, %19 : vector<16x32xf32>
    %21 = vector.broadcast %2 : vector<1x32xf32> to vector<16x32xf32>
    %22 = arith.addf %20, %21 : vector<16x32xf32>
    %23 = vector.shape_cast %22 : vector<16x32xf32> to vector<2x1x8x32xf32>
    %24 = vector.shape_cast %23 : vector<2x1x8x32xf32> to vector<2x1x8x32xf32>
    %25 = vector.broadcast %24 : vector<2x1x8x32xf32> to vector<2x4x8x32xf32>
    %26 = vector.shape_cast %25 : vector<2x4x8x32xf32> to vector<8x8x32xf32>
    %c0_9 = arith.constant 0 : index
    %c0_10 = arith.constant 0 : index
    %c0_11 = arith.constant 0 : index
    %27 = vector.load %arg1[%c0_9, %c0_10, %c0_11] : memref<8x32x8xf32, #tpu.memory_space<vmem>>, vector<8x32x8xf32>
    "tpu.trace_start"() <{level = 10 : i32, message = "gsd,gde->gse"}> : () -> ()
    %cst_12 = arith.constant dense<0.000000e+00> : vector<8x8x8xf32>
    %28 = tpu.matmul %26, %27, %cst_12 {dimension_numbers = #tpu.dot_dimension_numbers<[2], [1], [1], [2], [0, 0, 0, 1, 1, 2], [0], [0]>} : vector<8x8x32xf32>, vector<8x32x8xf32>, vector<8x8x8xf32> -> vector<8x8x8xf32>
    "tpu.trace_stop"() : () -> ()
    %c0_13 = arith.constant 0 : index
    %c0_14 = arith.constant 0 : index
    %c0_15 = arith.constant 0 : index
    %29 = vector.load %arg4[%c0_13, %c0_14, %c0_15] : memref<8x1x8xf32, #tpu.memory_space<vmem>>, vector<8x1x8xf32>
    %30 = vector.broadcast %29 : vector<8x1x8xf32> to vector<8x8x8xf32>
    %31 = arith.addf %28, %30 : vector<8x8x8xf32>
    %c0_16 = arith.constant 0 : index
    %c0_17 = arith.constant 0 : index
    %c0_18 = arith.constant 0 : index
    %32 = vector.load %arg2[%c0_16, %c0_17, %c0_18] : memref<8x32x8xf32, #tpu.memory_space<vmem>>, vector<8x32x8xf32>
    "tpu.trace_start"() <{level = 10 : i32, message = "gsd,gde->gse"}> : () -> ()
    %cst_19 = arith.constant dense<0.000000e+00> : vector<8x8x8xf32>
    %33 = tpu.matmul %26, %32, %cst_19 {dimension_numbers = #tpu.dot_dimension_numbers<[2], [1], [1], [2], [0, 0, 0, 1, 1, 2], [0], [0]>} : vector<8x8x32xf32>, vector<8x32x8xf32>, vector<8x8x8xf32> -> vector<8x8x8xf32>
    "tpu.trace_stop"() : () -> ()
    %c0_20 = arith.constant 0 : index
    %c0_21 = arith.constant 0 : index
    %c0_22 = arith.constant 0 : index
    %34 = vector.load %arg5[%c0_20, %c0_21, %c0_22] : memref<8x1x8xf32, #tpu.memory_space<vmem>>, vector<8x1x8xf32>
    %35 = vector.broadcast %34 : vector<8x1x8xf32> to vector<8x8x8xf32>
    %36 = arith.addf %33, %35 : vector<8x8x8xf32>
    %c0_23 = arith.constant 0 : index
    %c0_24 = arith.constant 0 : index
    %c0_25 = arith.constant 0 : index
    %37 = vector.load %arg3[%c0_23, %c0_24, %c0_25] : memref<8x32x8xf32, #tpu.memory_space<vmem>>, vector<8x32x8xf32>
    "tpu.trace_start"() <{level = 10 : i32, message = "gsd,gde->gse"}> : () -> ()
    %cst_26 = arith.constant dense<0.000000e+00> : vector<8x8x8xf32>
    %38 = tpu.matmul %26, %37, %cst_26 {dimension_numbers = #tpu.dot_dimension_numbers<[2], [1], [1], [2], [0, 0, 0, 1, 1, 2], [0], [0]>} : vector<8x8x32xf32>, vector<8x32x8xf32>, vector<8x8x8xf32> -> vector<8x8x8xf32>
    "tpu.trace_stop"() : () -> ()
    %c0_27 = arith.constant 0 : index
    %c0_28 = arith.constant 0 : index
    %c0_29 = arith.constant 0 : index
    %39 = vector.load %arg6[%c0_27, %c0_28, %c0_29] : memref<8x1x8xf32, #tpu.memory_space<vmem>>, vector<8x1x8xf32>
    %40 = vector.broadcast %39 : vector<8x1x8xf32> to vector<8x8x8xf32>
    %41 = arith.addf %38, %40 : vector<8x8x8xf32>
    "tpu.trace_start"() <{level = 10 : i32, message = "gqe,gke->gqk"}> : () -> ()
    %cst_30 = arith.constant dense<0.000000e+00> : vector<8x8x8xf32>
    %42 = tpu.matmul %31, %36, %cst_30 {dimension_numbers = #tpu.dot_dimension_numbers<[2], [2], [1], [1], [0, 0, 0, 1, 1, 1], [0], [0]>} : vector<8x8x8xf32>, vector<8x8x8xf32>, vector<8x8x8xf32> -> vector<8x8x8xf32>
    "tpu.trace_stop"() : () -> ()
    %cst_31 = arith.constant dense<0xFF800000> : vector<8x8xf32>
    %43 = vector.multi_reduction <maximumf>, %42, %cst_31 [2] : vector<8x8x8xf32> to vector<8x8xf32>
    %44 = vector.shape_cast %43 : vector<8x8xf32> to vector<8x8x1xf32>
    %45 = vector.broadcast %44 : vector<8x8x1xf32> to vector<8x8x8xf32>
    %46 = arith.subf %42, %45 : vector<8x8x8xf32>
    %47 = math.exp %46 : vector<8x8x8xf32>
    %cst_32 = arith.constant dense<0.000000e+00> : vector<8x8xf32>
    %48 = vector.multi_reduction <add>, %47, %cst_32 [2] : vector<8x8x8xf32> to vector<8x8xf32>
    %49 = vector.shape_cast %48 : vector<8x8xf32> to vector<8x8x1xf32>
    %50 = tpu.reciprocal %49 {approx = true} : vector<8x8x1xf32> -> vector<8x8x1xf32>
    %51 = vector.broadcast %50 : vector<8x8x1xf32> to vector<8x8x8xf32>
    %52 = arith.mulf %47, %51 : vector<8x8x8xf32>
    "tpu.trace_start"() <{level = 10 : i32, message = "gqk,gke->gqe"}> : () -> ()
    %cst_33 = arith.constant dense<0.000000e+00> : vector<8x8x8xf32>
    %53 = tpu.matmul %52, %41, %cst_33 {dimension_numbers = #tpu.dot_dimension_numbers<[2], [1], [1], [2], [0, 0, 0, 1, 1, 2], [0], [0]>} : vector<8x8x8xf32>, vector<8x8x8xf32>, vector<8x8x8xf32> -> vector<8x8x8xf32>
    "tpu.trace_stop"() : () -> ()
    %c0_34 = arith.constant 0 : index
    %c0_35 = arith.constant 0 : index
    %c0_36 = arith.constant 0 : index
    %54 = vector.load %arg7[%c0_34, %c0_35, %c0_36] : memref<8x8x32xf32, #tpu.memory_space<vmem>>, vector<8x8x32xf32>
    "tpu.trace_start"() <{level = 10 : i32, message = "gse,ged->gsd"}> : () -> ()
    %cst_37 = arith.constant dense<0.000000e+00> : vector<8x8x32xf32>
    %55 = tpu.matmul %53, %54, %cst_37 {dimension_numbers = #tpu.dot_dimension_numbers<[2], [1], [1], [2], [0, 0, 0, 1, 1, 2], [0], [0]>} : vector<8x8x8xf32>, vector<8x8x32xf32>, vector<8x8x32xf32> -> vector<8x8x32xf32>
    "tpu.trace_stop"() : () -> ()
    %56 = vector.shape_cast %55 : vector<8x8x32xf32> to vector<2x4x8x32xf32>
    %cst_38 = arith.constant dense<0.000000e+00> : vector<2x8x32xf32>
    %57 = vector.multi_reduction <add>, %56, %cst_38 [1] : vector<2x4x8x32xf32> to vector<2x8x32xf32>
    %58 = vector.shape_cast %57 : vector<2x8x32xf32> to vector<16x32xf32>
    %c0_39 = arith.constant 0 : index
    %c0_40 = arith.constant 0 : index
    %59 = vector.load %arg8[%c0_39, %c0_40] : memref<1x32xf32, #tpu.memory_space<vmem>>, vector<1x32xf32>
    %60 = vector.broadcast %59 : vector<1x32xf32> to vector<16x32xf32>
    %61 = arith.addf %58, %60 : vector<16x32xf32>
    %62 = arith.addf %0, %61 : vector<16x32xf32>
    %c0_41 = arith.constant 0 : index
    %c0_42 = arith.constant 0 : index
    %63 = vector.load %arg15[%c0_41, %c0_42] : memref<1x32xf32, #tpu.memory_space<vmem>>, vector<1x32xf32>
    %c0_43 = arith.constant 0 : index
    %c0_44 = arith.constant 0 : index
    %64 = vector.load %arg16[%c0_43, %c0_44] : memref<1x32xf32, #tpu.memory_space<vmem>>, vector<1x32xf32>
    %cst_45 = arith.constant dense<0.000000e+00> : vector<16xf32>
    %65 = vector.multi_reduction <add>, %62, %cst_45 [1] : vector<16x32xf32> to vector<16xf32>
    %66 = vector.shape_cast %65 : vector<16xf32> to vector<16x1xf32>
    %cst_46 = arith.constant 3.200000e+01 : f32
    %67 = vector.broadcast %cst_46 : f32 to vector<16x1xf32>
    %68 = arith.divf %66, %67 : vector<16x1xf32>
    %69 = vector.broadcast %68 : vector<16x1xf32> to vector<16x32xf32>
    %70 = arith.subf %62, %69 : vector<16x32xf32>
    %71 = arith.mulf %70, %70 : vector<16x32xf32>
    %cst_47 = arith.constant dense<0.000000e+00> : vector<16xf32>
    %72 = vector.multi_reduction <add>, %71, %cst_47 [1] : vector<16x32xf32> to vector<16xf32>
    %73 = vector.shape_cast %72 : vector<16xf32> to vector<16x1xf32>
    %cst_48 = arith.constant 3.200000e+01 : f32
    %74 = vector.broadcast %cst_48 : f32 to vector<16x1xf32>
    %75 = arith.divf %73, %74 : vector<16x1xf32>
    %cst_49 = arith.constant 9.99999974E-6 : f32
    %76 = vector.broadcast %cst_49 : f32 to vector<16x1xf32>
    %77 = arith.addf %75, %76 : vector<16x1xf32>
    %78 = math.rsqrt %77 : vector<16x1xf32>
    %79 = vector.broadcast %78 : vector<16x1xf32> to vector<16x32xf32>
    %80 = arith.mulf %70, %79 : vector<16x32xf32>
    %81 = vector.broadcast %63 : vector<1x32xf32> to vector<16x32xf32>
    %82 = arith.mulf %80, %81 : vector<16x32xf32>
    %83 = vector.broadcast %64 : vector<1x32xf32> to vector<16x32xf32>
    %84 = arith.addf %82, %83 : vector<16x32xf32>
    %c0_50 = arith.constant 0 : index
    %c0_51 = arith.constant 0 : index
    %85 = vector.load %arg9[%c0_50, %c0_51] : memref<32x64xf32, #tpu.memory_space<vmem>>, vector<32x64xf32>
    %cst_52 = arith.constant dense<0.000000e+00> : vector<16x64xf32>
    %86 = tpu.matmul %84, %85, %cst_52 {dimension_numbers = #tpu.dot_dimension_numbers<[1], [0], [0], [1], [0, 0, 1, 1], [], []>} : vector<16x32xf32>, vector<32x64xf32>, vector<16x64xf32> -> vector<16x64xf32>
    %c0_53 = arith.constant 0 : index
    %c0_54 = arith.constant 0 : index
    %87 = vector.load %arg10[%c0_53, %c0_54] : memref<1x64xf32, #tpu.memory_space<vmem>>, vector<1x64xf32>
    %88 = vector.broadcast %87 : vector<1x64xf32> to vector<16x64xf32>
    %89 = arith.addf %86, %88 : vector<16x64xf32>
    %cst_55 = arith.constant 0.000000e+00 : f32
    %90 = vector.broadcast %cst_55 : f32 to vector<16x64xf32>
    %91 = arith.maximumf %89, %90 : vector<16x64xf32>
    %c0_56 = arith.constant 0 : index
    %c0_57 = arith.constant 0 : index
    %92 = vector.load %arg11[%c0_56, %c0_57] : memref<64x32xf32, #tpu.memory_space<vmem>>, vector<64x32xf32>
    %cst_58 = arith.constant dense<0.000000e+00> : vector<16x32xf32>
    %93 = tpu.matmul %91, %92, %cst_58 {dimension_numbers = #tpu.dot_dimension_numbers<[1], [0], [0], [1], [0, 0, 1, 1], [], []>} : vector<16x64xf32>, vector<64x32xf32>, vector<16x32xf32> -> vector<16x32xf32>
    %c0_59 = arith.constant 0 : index
    %c0_60 = arith.constant 0 : index
    %94 = vector.load %arg12[%c0_59, %c0_60] : memref<1x32xf32, #tpu.memory_space<vmem>>, vector<1x32xf32>
    %95 = vector.broadcast %94 : vector<1x32xf32> to vector<16x32xf32>
    %96 = arith.addf %93, %95 : vector<16x32xf32>
    %97 = arith.addf %62, %96 : vector<16x32xf32>
    %c0_61 = arith.constant 0 : index
    %c0_62 = arith.constant 0 : index
    %98 = vector.load %arg17[%c0_61, %c0_62] : memref<16x32xf32, #tpu.memory_space<vmem>>, vector<16x32xf32>
    tpu.vector_store %arg17[%c0_61, %c0_62], %97 {strides = array<i32>} : memref<16x32xf32, #tpu.memory_space<vmem>>, vector<16x32xf32>,
    return
  }
}

</mosaic_0001>

<bundles_post_ra>
// kernel: tpu_custom_call.1
= control target key start
LH: loop header
LB: loop body
LE: loop exit
PB: predicated region body
PF: predicated region fallthrough
CT: control target
= control target key end

     0   :  { %s5908_s0 = inlined_call_operand.vmem [shape: f32[16,32], index: 0, kind: input, shape index: {}]   ;;  %s5909_s1 = inlined_call_operand.vmem [shape: f32[8,32,8], index: 1, kind: input, shape index: {}]   ;;  %s5910_s2 = inlined_call_operand.vmem [shape: f32[8,32,8], index: 2, kind: input, shape index: {}]   ;;  %s5911_s3 = inlined_call_operand.vmem [shape: f32[8,32,8], index: 3, kind: input, shape index: {}]   ;;  %s5912_s4 = inlined_call_operand.vmem [shape: f32[8,1,8], index: 4, kind: input, shape index: {}]   ;;  %s5913_s5 = inlined_call_operand.vmem [shape: f32[8,1,8], index: 5, kind: input, shape index: {}]   ;;  %s5914_s6 = inlined_call_operand.vmem [shape: f32[8,1,8], index: 6, kind: input, shape index: {}]   ;;  %s5915_s7 = inlined_call_operand.vmem [shape: f32[8,8,32], index: 7, kind: input, shape index: {}]   ;;  %s5916_s8 = inlined_call_operand.vmem [shape: f32[1,32], index: 8, kind: input, shape index: {}]   ;;  %s5917_s9 = inlined_call_operand.vmem [shape: f32[32,64], index: 9, kind: input, shape index: {}]   ;;  %s5918_s10 = inlined_call_operand.vmem [shape: f32[1,64], index: 10, kind: input, shape index: {}]   ;;  %s5919_s11 = inlined_call_operand.vmem [shape: f32[64,32], index: 11, kind: input, shape index: {}]   ;;  %s5920_s12 = inlined_call_operand.vmem [shape: f32[1,32], index: 12, kind: input, shape index: {}]   ;;  %s5921_s13 = inlined_call_operand.vmem [shape: f32[1,32], index: 13, kind: input, shape index: {}]   ;;  %s5922_s14 = inlined_call_operand.vmem [shape: f32[1,32], index: 14, kind: input, shape index: {}]   ;;  %s5923_s15 = inlined_call_operand.vmem [shape: f32[1,32], index: 15, kind: input, shape index: {}]   ;;  %s5924_s16 = inlined_call_operand.vmem [shape: f32[1,32], index: 16, kind: input, shape index: {}]   ;;  %s5925_s17 = inlined_call_operand.hbm [shape: f32[16,32], index: 17, kind: output, shape index: {}]  }
   0x1   :  { %5928 = sst [smem:[#allocation5_spill]] %s5908_s0 }
   0x2   :  { %5929 = sst [smem:[#allocation6_spill]] %s5909_s1 }
   0x3   :  { %s5930_s26 = sld [smem:[#allocation5_spill]]  ;;  %vm61_vm0 = vcmask 261120  }
   0x9   :  { %v57_v0 = vld [vmem:[%s5930_s26] sm:$0xff]  ;;  %v58_v1 = vld [vmem:[%s5930_s26 + $0x8] sm:$0xff] }
   0xa   :  { %22 = vsyncpa [#allocation3], 0  ;;  %v62_v2 = vsel %vm61_vm0, %v57_v0, 0.0  ;;  %v65_v3 = vsel %vm61_vm0, %v58_v1, 0.0  ;;  %v4966_v14 = vmov 0.0   ;;  %s5931_s30 = sld [smem:[#allocation6_spill]] }
   0xb   :  { %63 = vadd.xlane.f32.xlu0 %v62_v2  ;;  %4483 = vmatprep.subr.mxu0 %v4966_v14  ;;  %vm4967_vm1 = vmmov 0   ;;  %v4208_v30 = vld [vmem:[%s5921_s13] ss:$0 sm:$0xff]  ;;  %v762_v63 = vld [vmem:[%s5910_s2 + $0x18] sm:$0xff]  ;;  %v765_v2 = vld [vmem:[%s5910_s2 + $0x30] sm:$0xff]  ;;  %vm2055_vm2 = vcmask 64512  }
   0xc   :  { %4494 = vmatprep.subr.mxu1 %v4966_v14  ;;  %4491 = vmatprep.mubr.msk.f32.mxu0 %vm4967_vm1, %v4966_v14  ;;  %v4209_v32 = vld [vmem:[%s5922_s14] ss:$0 sm:$0xff]  ;;  %vm4106_vm3 = vcmask 523264  }
   0xd   :  { %4502 = vmatprep.mubr.msk.f32.mxu1 %vm4967_vm1, %v4966_v14 }
   0xf   :  { %66 = vadd.xlane.f32.xlu0 %v65_v3  ;;  %v760_v3 = vld [vmem:[%s5910_s2 + $0x8] sm:$0xff] }
  0x10   :  { %v108_v15 = vld [vmem:[%s5931_s30 + $0x18] sm:$0xff]  ;;  %v107_v17 = vld [vmem:[%s5931_s30 + $0x10] sm:$0xff]  ;;  %v106_v19 = vld [vmem:[%s5931_s30 + $0x8] sm:$0xff] }
  0x11   :  { %v112_v16 = vld [vmem:[%s5931_s30 + $0x38] sm:$0xff]  ;;  %4484 = vmatpush3.msra.mxu0 %v108_v15  ;;  %v111_v18 = vld [vmem:[%s5931_s30 + $0x30] sm:$0xff]  ;;  %v110_v20 = vld [vmem:[%s5931_s30 + $0x28] sm:$0xff] }
  0x12   :  { %4495 = vmatpush3.msra.mxu1 %v112_v16  ;;  %4485 = vmatprep.subr.mxu0 %v4966_v14  ;;  %v105_v21 = vld [vmem:[%s5931_s30] sm:$0xff]  ;;  %v116_v35 = vld [vmem:[%s5931_s30 + $0x58] sm:$0xff]  ;;  %v115_v37 = vld [vmem:[%s5931_s30 + $0x50] sm:$0xff] }
  0x13   :  { %4496 = vmatprep.subr.mxu1 %v4966_v14  ;;  %4486 = vmatpush3.msra.mxu0 %v107_v17  ;;  %v109_v22 = vld [vmem:[%s5931_s30 + $0x20] sm:$0xff]  ;;  %v120_v36 = vld [vmem:[%s5931_s30 + $0x78] sm:$0xff]  ;;  %v119_v38 = vld [vmem:[%s5931_s30 + $0x70] sm:$0xff] }
  0x14   :  { %4497 = vmatpush3.msra.mxu1 %v111_v18  ;;  %4487 = vmatprep.subr.mxu0 %v4966_v14  ;;  %v114_v39 = vld [vmem:[%s5931_s30 + $0x48] sm:$0xff]  ;;  %v113_v41 = vld [vmem:[%s5931_s30 + $0x40] sm:$0xff]  ;;  %v124_v44 = vld [vmem:[%s5931_s30 + $0x98] sm:$0xff] }
  0x15   :  { %4498 = vmatprep.subr.mxu1 %v4966_v14  ;;  %4488 = vmatpush3.msra.mxu0 %v106_v19  ;;  %v118_v40 = vld [vmem:[%s5931_s30 + $0x68] sm:$0xff]  ;;  %v117_v42 = vld [vmem:[%s5931_s30 + $0x60] sm:$0xff]  ;;  %v128_v45 = vld [vmem:[%s5931_s30 + $0xb8] sm:$0xff] }
  0x16   :  { %4499 = vmatpush3.msra.mxu1 %v110_v20  ;;  %4489 = vmatprep.subr.mxu0 %v4966_v14  ;;  %v123_v47 = vld [vmem:[%s5931_s30 + $0x90] sm:$0xff]  ;;  %v122_v49 = vld [vmem:[%s5931_s30 + $0x88] sm:$0xff]  ;;  %v121_v52 = vld [vmem:[%s5931_s30 + $0x80] sm:$0xff] }
  0x17   :  { %4500 = vmatprep.subr.mxu1 %v4966_v14  ;;  %4490 = vmatpush3.msra.mxu0 %v105_v21  ;;  %v127_v48 = vld [vmem:[%s5931_s30 + $0xb0] sm:$0xff]  ;;  %v126_v50 = vld [vmem:[%s5931_s30 + $0xa8] sm:$0xff]  ;;  %v125_v53 = vld [vmem:[%s5931_s30 + $0xa0] sm:$0xff] }
  0x18   :  { %4501 = vmatpush3.msra.mxu1 %v109_v22  ;;  %4505 = vmatprep.subr.mxu0 %v4966_v14  ;;  %v132_v55 = vld [vmem:[%s5931_s30 + $0xd8] sm:$0xff]  ;;  %v131_v57 = vld [vmem:[%s5931_s30 + $0xd0] sm:$0xff]  ;;  %v130_v59 = vld [vmem:[%s5931_s30 + $0xc8] sm:$0xff] }
  0x19   :  { %4516 = vmatprep.subr.mxu1 %v4966_v14  ;;  %v136_v56 = vld [vmem:[%s5931_s30 + $0xf8] sm:$0xff]  ;;  %v135_v58 = vld [vmem:[%s5931_s30 + $0xf0] sm:$0xff]  ;;  %v134_v60 = vld [vmem:[%s5931_s30 + $0xe8] sm:$0xff] }
  0x1a   :  { %v129_v61 = vld [vmem:[%s5931_s30 + $0xc0] sm:$0xff]  ;;  %v778_v16 = vld [vmem:[%s5910_s2 + $0x98] sm:$0xff]  ;;  %v777_v18 = vld [vmem:[%s5910_s2 + $0x90] sm:$0xff] }
  0x1b   :  { %v133_v62 = vld [vmem:[%s5931_s30 + $0xe0] sm:$0xff]  ;;  %v782_v17 = vld [vmem:[%s5910_s2 + $0xb8] sm:$0xff]  ;;  %v781_v19 = vld [vmem:[%s5910_s2 + $0xb0] sm:$0xff] }
  0x1c   :  { %v771_v15 = vld [vmem:[%s5910_s2 + $0x60] sm:$0xff]  ;;  %v776_v20 = vld [vmem:[%s5910_s2 + $0x88] sm:$0xff] }
  0x1d   :  { %v780_v21 = vld [vmem:[%s5910_s2 + $0xa8] sm:$0xff]  ;;  %v775_v22 = vld [vmem:[%s5910_s2 + $0x80] sm:$0xff] }
  0x94   :  { %v64_v4 = vpop.xlane.xlu0 %63 }
  0x95   :  { %v69_v5 = vmul.f32 0.03125, %v64_v4  ;;  %v764_v4 = vld [vmem:[%s5910_s2 + $0x28] sm:$0xff] }
  0x97   :  { %v71_v6 = vsub.f32 %v57_v0, %v69_v5  ;;  %v766_v0 = vld [vmem:[%s5910_s2 + $0x38] sm:$0xff]  ;;  %v759_v5 = vld [vmem:[%s5910_s2] sm:$0xff] }
  0x98   :  { %v67_v7 = vpop.xlane.xlu0 %66 }
  0x99   :  { %v70_v8 = vmul.f32 0.03125, %v67_v7  ;;  %v73_v9 = vmul.f32 %v71_v6, %v71_v6  ;;  %v770_v7 = vld [vmem:[%s5910_s2 + $0x58] sm:$0xff] }
  0x9b   :  { %v5069_v10 = vsub.f32 %v58_v1, %v70_v8  ;;  %v75_v11 = vsel %vm61_vm0, %v73_v9, 0.0  ;;  %v761_v1 = vld [vmem:[%s5910_s2 + $0x10] sm:$0xff]  ;;  %v774_v8 = vld [vmem:[%s5910_s2 + $0x78] sm:$0xff] }
  0x9c   :  { %76 = vadd.xlane.f32.xlu1 %v75_v11  ;;  %v769_v9 = vld [vmem:[%s5910_s2 + $0x50] sm:$0xff]  ;;  %v768_v11 = vld [vmem:[%s5910_s2 + $0x48] sm:$0xff] }
  0x9d   :  { %v74_v12 = vmul.f32 %v5069_v10, %v5069_v10 }
  0x9f   :  { %v78_v13 = vsel %vm61_vm0, %v74_v12, 0.0  ;;  %v772_v12 = vld [vmem:[%s5910_s2 + $0x68] sm:$0xff] }
  0xa0   :  { %79 = vadd.xlane.f32.xlu1 %v78_v13  ;;  %v767_v13 = vld [vmem:[%s5910_s2 + $0x40] sm:$0xff] }
 0x125   :  { %v77_v23 = vpop.xlane.xlu1 %76 }
 0x126   :  { %v81_v24 = vmul.f32 0.03125, %v77_v23  ;;  %v779_v23 = vld [vmem:[%s5910_s2 + $0xa0] sm:$0xff] }
 0x128   :  { %v83_v25 = vadd.f32 1e-05, %v81_v24  ;;  %v786_v24 = vld [vmem:[%s5910_s2 + $0xd8] sm:$0xff] }
 0x129   :  { %v80_v26 = vpop.xlane.xlu1 %79 }
 0x12a   :  { %4902 = vrsqrt.f32 %v83_v25  ;;  %v82_v27 = vmul.f32 0.03125, %v80_v26  ;;  %v790_v25 = vld [vmem:[%s5910_s2 + $0xf8] sm:$0xff]  ;;  %v785_v26 = vld [vmem:[%s5910_s2 + $0xd0] sm:$0xff] }
 0x12c   :  { %v84_v28 = vadd.f32 1e-05, %v82_v27  ;;  %v789_v27 = vld [vmem:[%s5910_s2 + $0xf0] sm:$0xff] }
 0x12e   :  { %4904 = vrsqrt.f32 %v84_v28  ;;  %v784_v28 = vld [vmem:[%s5910_s2 + $0xc8] sm:$0xff] }
 0x137   :  { %v4903_v29 = vpop.eup %4902 }
 0x138   :  { %v87_v31 = vmul.f32 %v4903_v29, %v71_v6  ;;  %v763_v6 = vld [vmem:[%s5910_s2 + $0x20] sm:$0xff]  ;;  %v788_v29 = vld [vmem:[%s5910_s2 + $0xe8] sm:$0xff] }
 0x13a   :  { %v95_v33 = vmul.f32 %v4208_v30, %v87_v31  ;;  %v787_v31 = vld [vmem:[%s5910_s2 + $0xe0] sm:$0xff] }
 0x13b   :  { %v4905_v43 = vpop.eup %4904 }
 0x13c   :  { %v5119_v34 = vadd.f32 %v4209_v32, %v95_v33  ;;  %v88_v46 = vmul.f32 %v4905_v43, %v5069_v10  ;;  %v773_v10 = vld [vmem:[%s5910_s2 + $0x70] sm:$0xff]  ;;  %v1414_v33 = vld [vmem:[%s5911_s3 + $0x38] sm:$0xff] }
 0x13d   :  { %v1417_v43 = vld [vmem:[%s5911_s3 + $0x50] sm:$0xff] }
 0x13e   :  { %4492 = vmatmul.mubr.msk.f32.vlgmr.msra.gmra.mxu0 %vm61_vm0, %v5119_v34  ;;  %4503 = vmatmul.mubr.msk.f32.vlgmr.msra.gmra.mxu1 %vm61_vm0, %v5119_v34  ;;  %v96_v51 = vmul.f32 %v4208_v30, %v88_v46  ;;  %v783_v30 = vld [vmem:[%s5910_s2 + $0xc0] sm:$0xff]  ;;  %v1420_v46 = vld [vmem:[%s5911_s3 + $0x68] sm:$0xff] }
 0x13f   :  { %4506 = vmatpush3.msra.mxu0 %v116_v35  ;;  %4517 = vmatpush3.msra.mxu1 %v120_v36  ;;  %v1409_v35 = vld [vmem:[%s5911_s3 + $0x10] sm:$0xff] }
 0x140   :  { %4507 = vmatprep.subr.mxu0 %v4966_v14  ;;  %4518 = vmatprep.subr.mxu1 %v4966_v14  ;;  %v5196_v54 = vadd.f32 %v4209_v32, %v96_v51  ;;  %v1410_v32 = vld [vmem:[%s5911_s3 + $0x18] sm:$0xff]  ;;  %v1413_v36 = vld [vmem:[%s5911_s3 + $0x30] sm:$0xff] }
 0x141   :  { %4508 = vmatpush3.msra.mxu0 %v115_v37  ;;  %4519 = vmatpush3.msra.mxu1 %v119_v38  ;;  %v1408_v37 = vld [vmem:[%s5911_s3 + $0x8] sm:$0xff]  ;;  %v1425_v51 = vld [vmem:[%s5911_s3 + $0x90] sm:$0xff] }
 0x142   :  { %4509 = vmatprep.subr.mxu0 %v4966_v14  ;;  %4520 = vmatprep.subr.mxu1 %v4966_v14  ;;  %v1412_v38 = vld [vmem:[%s5911_s3 + $0x28] sm:$0xff] }
 0x143   :  { %4510 = vmatpush3.msra.mxu0 %v114_v39  ;;  %4521 = vmatpush3.msra.mxu1 %v118_v40  ;;  %v1407_v39 = vld [vmem:[%s5911_s3] sm:$0xff] }
 0x144   :  { %4511 = vmatprep.subr.mxu0 %v4966_v14  ;;  %4522 = vmatprep.subr.mxu1 %v4966_v14  ;;  %v1411_v40 = vld [vmem:[%s5911_s3 + $0x20] sm:$0xff] }
 0x145   :  { %4512 = vmatpush3.msra.mxu0 %v113_v41  ;;  %4513 = vmatprep.mubr.msk.f32.mxu0 %vm4967_vm1, %v4966_v14  ;;  %v1418_v41 = vld [vmem:[%s5911_s3 + $0x58] sm:$0xff] }
 0x146   :  { %4523 = vmatpush3.msra.mxu1 %v117_v42  ;;  %4524 = vmatprep.mubr.msk.f32.mxu1 %vm4967_vm1, %v4966_v14  ;;  %v1422_v42 = vld [vmem:[%s5911_s3 + $0x78] sm:$0xff] }
 0x147   :  { %4514 = vmatmul.mubr.msk.f32.vlgmr.msra.gmra.mxu0 %vm61_vm0, %v5119_v34  ;;  %4525 = vmatmul.mubr.msk.f32.vlgmr.msra.gmra.mxu1 %vm61_vm0, %v5119_v34 }
 0x148   :  { %4527 = vmatprep.subr.mxu0 %v4966_v14  ;;  %4538 = vmatprep.subr.mxu1 %v4966_v14 }
 0x149   :  { %4528 = vmatpush3.msra.mxu0 %v124_v44  ;;  %4539 = vmatpush3.msra.mxu1 %v128_v45  ;;  %v1421_v44 = vld [vmem:[%s5911_s3 + $0x70] sm:$0xff]  ;;  %v1416_v45 = vld [vmem:[%s5911_s3 + $0x48] sm:$0xff] }
 0x14a   :  { %4529 = vmatprep.subr.mxu0 %v4966_v14  ;;  %4540 = vmatprep.subr.mxu1 %v4966_v14 }
 0x14b   :  { %4530 = vmatpush3.msra.mxu0 %v123_v47  ;;  %4541 = vmatpush3.msra.mxu1 %v127_v48  ;;  %v1415_v47 = vld [vmem:[%s5911_s3 + $0x40] sm:$0xff] }
 0x14c   :  { %4531 = vmatprep.subr.mxu0 %v4966_v14  ;;  %4542 = vmatprep.subr.mxu1 %v4966_v14  ;;  %v1419_v48 = vld [vmem:[%s5911_s3 + $0x60] sm:$0xff] }
 0x14d   :  { %4532 = vmatpush3.msra.mxu0 %v122_v49  ;;  %4543 = vmatpush3.msra.mxu1 %v126_v50  ;;  %v1426_v49 = vld [vmem:[%s5911_s3 + $0x98] sm:$0xff] }
 0x14e   :  { %4533 = vmatprep.subr.mxu0 %v4966_v14  ;;  %4544 = vmatprep.subr.mxu1 %v4966_v14  ;;  %v1430_v50 = vld [vmem:[%s5911_s3 + $0xb8] sm:$0xff] }
 0x14f   :  { %4534 = vmatpush3.msra.mxu0 %v121_v52  ;;  %4535 = vmatprep.mubr.msk.f32.mxu0 %vm4967_vm1, %v4966_v14  ;;  %v1429_v52 = vld [vmem:[%s5911_s3 + $0xb0] sm:$0xff] }
 0x150   :  { %4545 = vmatpush3.msra.mxu1 %v125_v53  ;;  %4546 = vmatprep.mubr.msk.f32.mxu1 %vm4967_vm1, %v4966_v14  ;;  %v1428_v53 = vld [vmem:[%s5911_s3 + $0xa8] sm:$0xff] }
 0x151   :  { %4536 = vmatmul.mubr.msk.f32.vlgmr.msra.gmra.mxu0 %vm61_vm0, %v5196_v54  ;;  %4547 = vmatmul.mubr.msk.f32.vlgmr.msra.gmra.mxu1 %vm61_vm0, %v5196_v54 }
 0x152   :  { %4549 = vmatprep.subr.mxu0 %v4966_v14  ;;  %4560 = vmatprep.subr.mxu1 %v4966_v14 }
 0x153   :  { %4550 = vmatpush3.msra.mxu0 %v132_v55  ;;  %4561 = vmatpush3.msra.mxu1 %v136_v56  ;;  %v1423_v55 = vld [vmem:[%s5911_s3 + $0x80] sm:$0xff] }
 0x154   :  { %4551 = vmatprep.subr.mxu0 %v4966_v14  ;;  %4562 = vmatprep.subr.mxu1 %v4966_v14  ;;  %v1427_v56 = vld [vmem:[%s5911_s3 + $0xa0] sm:$0xff] }
 0x155   :  { %4552 = vmatpush3.msra.mxu0 %v131_v57  ;;  %4563 = vmatpush3.msra.mxu1 %v135_v58  ;;  %v1434_v57 = vld [vmem:[%s5911_s3 + $0xd8] sm:$0xff] }
 0x156   :  { %4553 = vmatprep.subr.mxu0 %v4966_v14  ;;  %4564 = vmatprep.subr.mxu1 %v4966_v14  ;;  %v1438_v58 = vld [vmem:[%s5911_s3 + $0xf8] sm:$0xff] }
 0x157   :  { %4554 = vmatpush3.msra.mxu0 %v130_v59  ;;  %4565 = vmatpush3.msra.mxu1 %v134_v60  ;;  %v1433_v59 = vld [vmem:[%s5911_s3 + $0xd0] sm:$0xff] }
 0x158   :  { %4555 = vmatprep.subr.mxu0 %v4966_v14  ;;  %4566 = vmatprep.subr.mxu1 %v4966_v14  ;;  %v1437_v60 = vld [vmem:[%s5911_s3 + $0xf0] sm:$0xff] }
 0x159   :  { %4556 = vmatpush3.msra.mxu0 %v129_v61  ;;  %4557 = vmatprep.mubr.msk.f32.mxu0 %vm4967_vm1, %v4966_v14  ;;  %v1432_v61 = vld [vmem:[%s5911_s3 + $0xc8] sm:$0xff] }
 0x15a   :  { %4567 = vmatpush3.msra.mxu1 %v133_v62  ;;  %4568 = vmatprep.mubr.msk.f32.mxu1 %vm4967_vm1, %v4966_v14  ;;  %v1436_v62 = vld [vmem:[%s5911_s3 + $0xe8] sm:$0xff] }
 0x15b   :  { %4558 = vmatmul.mubr.msk.f32.vlgmr.msra.gmra.mxu0 %vm61_vm0, %v5196_v54  ;;  %4569 = vmatmul.mubr.msk.f32.vlgmr.msra.gmra.mxu1 %vm61_vm0, %v5196_v54 }
 0x15c   :  { %4571 = vmatprep.subr.mxu0 %v4966_v14  ;;  %4582 = vmatprep.subr.mxu1 %v4966_v14 }
 0x15d   :  { %4572 = vmatpush3.msra.mxu0 %v762_v63  ;;  %4583 = vmatpush3.msra.mxu1 %v766_v0  ;;  %v1431_v63 = vld [vmem:[%s5911_s3 + $0xc0] sm:$0xff] }
 0x15e   :  { %4573 = vmatprep.subr.mxu0 %v4966_v14  ;;  %4584 = vmatprep.subr.mxu1 %v4966_v14  ;;  %v1435_v0 = vld [vmem:[%s5911_s3 + $0xe0] sm:$0xff] }
 0x15f   :  { %4574 = vmatpush3.msra.mxu0 %v761_v1  ;;  %4585 = vmatpush3.msra.mxu1 %v765_v2 }
 0x160   :  { %4575 = vmatprep.subr.mxu0 %v4966_v14  ;;  %4586 = vmatprep.subr.mxu1 %v4966_v14 }
 0x161   :  { %4576 = vmatpush3.msra.mxu0 %v760_v3  ;;  %4587 = vmatpush3.msra.mxu1 %v764_v4 }
 0x162   :  { %4577 = vmatprep.subr.mxu0 %v4966_v14  ;;  %4588 = vmatprep.subr.mxu1 %v4966_v14 }
 0x163   :  { %4578 = vmatpush3.msra.mxu0 %v759_v5  ;;  %4579 = vmatprep.mubr.msk.f32.mxu0 %vm4967_vm1, %v4966_v14 }
 0x164   :  { %4589 = vmatpush3.msra.mxu1 %v763_v6  ;;  %4590 = vmatprep.mubr.msk.f32.mxu1 %vm4967_vm1, %v4966_v14 }
 0x165   :  { %4580 = vmatmul.mubr.msk.f32.vlgmr.msra.gmra.mxu0 %vm61_vm0, %v5119_v34  ;;  %4591 = vmatmul.mubr.msk.f32.vlgmr.msra.gmra.mxu1 %vm61_vm0, %v5119_v34 }
 0x166   :  { %4593 = vmatprep.subr.mxu0 %v4966_v14  ;;  %4604 = vmatprep.subr.mxu1 %v4966_v14 }
 0x167   :  { %4594 = vmatpush3.msra.mxu0 %v770_v7  ;;  %4605 = vmatpush3.msra.mxu1 %v774_v8 }
 0x168   :  { %4595 = vmatprep.subr.mxu0 %v4966_v14  ;;  %4606 = vmatprep.subr.mxu1 %v4966_v14 }
 0x169   :  { %4596 = vmatpush3.msra.mxu0 %v769_v9  ;;  %4607 = vmatpush3.msra.mxu1 %v773_v10 }
 0x16a   :  { %4597 = vmatprep.subr.mxu0 %v4966_v14  ;;  %4608 = vmatprep.subr.mxu1 %v4966_v14 }
 0x16b   :  { %4598 = vmatpush3.msra.mxu0 %v768_v11  ;;  %4609 = vmatpush3.msra.mxu1 %v772_v12 }
 0x16c   :  { %4599 = vmatprep.subr.mxu0 %v4966_v14  ;;  %4610 = vmatprep.subr.mxu1 %v4966_v14 }
 0x16d   :  { %4600 = vmatpush3.msra.mxu0 %v767_v13  ;;  %4601 = vmatprep.mubr.msk.f32.mxu0 %vm4967_vm1, %v4966_v14 }
 0x16e   :  { %4611 = vmatpush3.msra.mxu1 %v771_v15  ;;  %4612 = vmatprep.mubr.msk.f32.mxu1 %vm4967_vm1, %v4966_v14 }
 0x16f   :  { %4602 = vmatmul.mubr.msk.f32.vlgmr.msra.gmra.mxu0 %vm61_vm0, %v5119_v34  ;;  %4613 = vmatmul.mubr.msk.f32.vlgmr.msra.gmra.mxu1 %vm61_vm0, %v5119_v34 }
 0x170   :  { %4615 = vmatprep.subr.mxu0 %v4966_v14  ;;  %4626 = vmatprep.subr.mxu1 %v4966_v14 }
 0x171   :  { %4616 = vmatpush3.msra.mxu0 %v778_v16  ;;  %4627 = vmatpush3.msra.mxu1 %v782_v17  ;;  %v4226_v17 = vld [vmem:[%s5913_s5] ss:$0 sm:$0xff] }
 0x172   :  { %4617 = vmatprep.subr.mxu0 %v4966_v14  ;;  %4628 = vmatprep.subr.mxu1 %v4966_v14 }
 0x173   :  { %4618 = vmatpush3.msra.mxu0 %v777_v18  ;;  %4629 = vmatpush3.msra.mxu1 %v781_v19 }
 0x174   :  { %4619 = vmatprep.subr.mxu0 %v4966_v14  ;;  %4630 = vmatprep.subr.mxu1 %v4966_v14 }
 0x175   :  { %4620 = vmatpush3.msra.mxu0 %v776_v20  ;;  %4631 = vmatpush3.msra.mxu1 %v780_v21  ;;  %v4210_v20 = vld [vmem:[%s5912_s4] ss:$0 sm:$0xff] }
 0x176   :  { %4621 = vmatprep.subr.mxu0 %v4966_v14  ;;  %4632 = vmatprep.subr.mxu1 %v4966_v14 }
 0x177   :  { %4622 = vmatpush3.msra.mxu0 %v775_v22  ;;  %4623 = vmatprep.mubr.msk.f32.mxu0 %vm4967_vm1, %v4966_v14  ;;  %v4227_v22 = vld [vmem:[%s5913_s5 + $0x1] ss:$0 sm:$0xff] }
 0x178   :  { %4633 = vmatpush3.msra.mxu1 %v779_v23  ;;  %4634 = vmatprep.mubr.msk.f32.mxu1 %vm4967_vm1, %v4966_v14 }
 0x179   :  { %4624 = vmatmul.mubr.msk.f32.vlgmr.msra.gmra.mxu0 %vm61_vm0, %v5196_v54  ;;  %4635 = vmatmul.mubr.msk.f32.vlgmr.msra.gmra.mxu1 %vm61_vm0, %v5196_v54 }
 0x17a   :  { %4637 = vmatprep.subr.mxu0 %v4966_v14  ;;  %4648 = vmatprep.subr.mxu1 %v4966_v14 }
 0x17b   :  { %4638 = vmatpush3.msra.mxu0 %v786_v24  ;;  %4649 = vmatpush3.msra.mxu1 %v790_v25 }
 0x17c   :  { %4639 = vmatprep.subr.mxu0 %v4966_v14  ;;  %4650 = vmatprep.subr.mxu1 %v4966_v14 }
 0x17d   :  { %4640 = vmatpush3.msra.mxu0 %v785_v26  ;;  %4651 = vmatpush3.msra.mxu1 %v789_v27  ;;  %v4211_v26 = vld [vmem:[%s5912_s4 + $0x1] ss:$0 sm:$0xff] }
 0x17e   :  { %4641 = vmatprep.subr.mxu0 %v4966_v14  ;;  %4652 = vmatprep.subr.mxu1 %v4966_v14 }
 0x17f   :  { %4642 = vmatpush3.msra.mxu0 %v784_v28  ;;  %4653 = vmatpush3.msra.mxu1 %v788_v29  ;;  %v4228_v29 = vld [vmem:[%s5913_s5 + $0x2] ss:$0 sm:$0xff] }
 0x180   :  { %4643 = vmatprep.subr.mxu0 %v4966_v14  ;;  %4654 = vmatprep.subr.mxu1 %v4966_v14 }
 0x181   :  { %4644 = vmatpush3.msra.mxu0 %v783_v30  ;;  %4645 = vmatprep.mubr.msk.f32.mxu0 %vm4967_vm1, %v4966_v14  ;;  %v4229_v30 = vld [vmem:[%s5913_s5 + $0x3] ss:$0 sm:$0xff] }
 0x182   :  { %4655 = vmatpush3.msra.mxu1 %v787_v31  ;;  %4656 = vmatprep.mubr.msk.f32.mxu1 %vm4967_vm1, %v4966_v14 }
 0x183   :  { %4646 = vmatmul.mubr.msk.f32.vlgmr.msra.gmra.mxu0 %vm61_vm0, %v5196_v54  ;;  %4657 = vmatmul.mubr.msk.f32.vlgmr.msra.gmra.mxu1 %vm61_vm0, %v5196_v54 }
 0x184   :  { %4659 = vmatprep.subr.mxu0 %v4966_v14  ;;  %4670 = vmatprep.subr.mxu1 %v4966_v14 }
 0x185   :  { %4660 = vmatpush3.msra.mxu0 %v1410_v32  ;;  %4671 = vmatpush3.msra.mxu1 %v1414_v33  ;;  %v4212_v33 = vld [vmem:[%s5912_s4 + $0x2] ss:$0 sm:$0xff] }
 0x186   :  { %4661 = vmatprep.subr.mxu0 %v4966_v14  ;;  %4672 = vmatprep.subr.mxu1 %v4966_v14 }
 0x187   :  { %4662 = vmatpush3.msra.mxu0 %v1409_v35  ;;  %4673 = vmatpush3.msra.mxu1 %v1413_v36  ;;  %v4213_v35 = vld [vmem:[%s5912_s4 + $0x3] ss:$0 sm:$0xff] }
 0x188   :  { %4663 = vmatprep.subr.mxu0 %v4966_v14  ;;  %4674 = vmatprep.subr.mxu1 %v4966_v14 }
 0x189   :  { %4664 = vmatpush3.msra.mxu0 %v1408_v37  ;;  %4675 = vmatpush3.msra.mxu1 %v1412_v38 }
 0x18a   :  { %4665 = vmatprep.subr.mxu0 %v4966_v14  ;;  %4676 = vmatprep.subr.mxu1 %v4966_v14 }
 0x18b   :  { %4666 = vmatpush3.msra.mxu0 %v1407_v39  ;;  %4667 = vmatprep.mubr.msk.f32.mxu0 %vm4967_vm1, %v4966_v14 }
 0x18c   :  { %4677 = vmatpush3.msra.mxu1 %v1411_v40  ;;  %4678 = vmatprep.mubr.msk.f32.mxu1 %vm4967_vm1, %v4966_v14 }
 0x18d   :  { %4668 = vmatmul.mubr.msk.f32.vlgmr.msra.gmra.mxu0 %vm61_vm0, %v5119_v34  ;;  %4679 = vmatmul.mubr.msk.f32.vlgmr.msra.gmra.mxu1 %vm61_vm0, %v5119_v34 }
 0x18e   :  { %4681 = vmatprep.subr.mxu0 %v4966_v14  ;;  %4692 = vmatprep.subr.mxu1 %v4966_v14 }
 0x18f   :  { %4682 = vmatpush3.msra.mxu0 %v1418_v41  ;;  %4693 = vmatpush3.msra.mxu1 %v1422_v42  ;;  %v4230_v42 = vld [vmem:[%s5913_s5 + $0x4] ss:$0 sm:$0xff] }
 0x190   :  { %4683 = vmatprep.subr.mxu0 %v4966_v14  ;;  %4694 = vmatprep.subr.mxu1 %v4966_v14 }
 0x191   :  { %4684 = vmatpush3.msra.mxu0 %v1417_v43  ;;  %4695 = vmatpush3.msra.mxu1 %v1421_v44  ;;  %v4231_v43 = vld [vmem:[%s5913_s5 + $0x5] ss:$0 sm:$0xff] }
 0x192   :  { %4685 = vmatprep.subr.mxu0 %v4966_v14  ;;  %4696 = vmatprep.subr.mxu1 %v4966_v14 }
 0x193   :  { %4686 = vmatpush3.msra.mxu0 %v1416_v45  ;;  %4697 = vmatpush3.msra.mxu1 %v1420_v46  ;;  %v4214_v46 = vld [vmem:[%s5912_s4 + $0x4] ss:$0 sm:$0xff] }
 0x194   :  { %4687 = vmatprep.subr.mxu0 %v4966_v14  ;;  %4698 = vmatprep.subr.mxu1 %v4966_v14 }
 0x195   :  { %4688 = vmatpush3.msra.mxu0 %v1415_v47  ;;  %4689 = vmatprep.mubr.msk.f32.mxu0 %vm4967_vm1, %v4966_v14  ;;  %v4215_v47 = vld [vmem:[%s5912_s4 + $0x5] ss:$0 sm:$0xff] }
 0x196   :  { %4699 = vmatpush3.msra.mxu1 %v1419_v48  ;;  %4700 = vmatprep.mubr.msk.f32.mxu1 %vm4967_vm1, %v4966_v14 }
 0x197   :  { %4690 = vmatmul.mubr.msk.f32.vlgmr.msra.gmra.mxu0 %vm61_vm0, %v5119_v34  ;;  %4701 = vmatmul.mubr.msk.f32.vlgmr.msra.gmra.mxu1 %vm61_vm0, %v5119_v34  ;;  %v1424_v34 = vld [vmem:[%s5911_s3 + $0x88] sm:$0xff] }
 0x198   :  { %4703 = vmatprep.subr.mxu0 %v4966_v14  ;;  %4714 = vmatprep.subr.mxu1 %v4966_v14 }
 0x199   :  { %4704 = vmatpush3.msra.mxu0 %v1426_v49  ;;  %4715 = vmatpush3.msra.mxu1 %v1430_v50 }
 0x19a   :  { %4705 = vmatprep.subr.mxu0 %v4966_v14  ;;  %4716 = vmatprep.subr.mxu1 %v4966_v14 }
 0x19b   :  { %4706 = vmatpush3.msra.mxu0 %v1425_v51  ;;  %4717 = vmatpush3.msra.mxu1 %v1429_v52 }
 0x19c   :  { %4707 = vmatprep.subr.mxu0 %v4966_v14  ;;  %4718 = vmatprep.subr.mxu1 %v4966_v14 }
 0x19d   :  { %4708 = vmatpush3.msra.mxu0 %v1424_v34  ;;  %4719 = vmatpush3.msra.mxu1 %v1428_v53  ;;  %v4232_v53 = vld [vmem:[%s5913_s5 + $0x6] ss:$0 sm:$0xff] }
 0x19e   :  { %4709 = vmatprep.subr.mxu0 %v4966_v14  ;;  %4720 = vmatprep.subr.mxu1 %v4966_v14 }
 0x19f   :  { %4710 = vmatpush3.msra.mxu0 %v1423_v55  ;;  %4711 = vmatprep.mubr.msk.f32.mxu0 %vm4967_vm1, %v4966_v14  ;;  %v4233_v55 = vld [vmem:[%s5913_s5 + $0x7] ss:$0 sm:$0xff] }
 0x1a0   :  { %4721 = vmatpush3.msra.mxu1 %v1427_v56  ;;  %4722 = vmatprep.mubr.msk.f32.mxu1 %vm4967_vm1, %v4966_v14 }
 0x1a1   :  { %4712 = vmatmul.mubr.msk.f32.vlgmr.msra.gmra.mxu0 %vm61_vm0, %v5196_v54  ;;  %4723 = vmatmul.mubr.msk.f32.vlgmr.msra.gmra.mxu1 %vm61_vm0, %v5196_v54 }
 0x1a2   :  { %4725 = vmatprep.subr.mxu0 %v4966_v14  ;;  %4736 = vmatprep.subr.mxu1 %v4966_v14 }
 0x1a3   :  { %4726 = vmatpush3.msra.mxu0 %v1434_v57  ;;  %4737 = vmatpush3.msra.mxu1 %v1438_v58  ;;  %v4216_v58 = vld [vmem:[%s5912_s4 + $0x6] ss:$0 sm:$0xff] }
 0x1a4   :  { %4727 = vmatprep.subr.mxu0 %v4966_v14  ;;  %4738 = vmatprep.subr.mxu1 %v4966_v14 }
 0x1a5   :  { %4728 = vmatpush3.msra.mxu0 %v1433_v59  ;;  %4739 = vmatpush3.msra.mxu1 %v1437_v60  ;;  %v4217_v59 = vld [vmem:[%s5912_s4 + $0x7] ss:$0 sm:$0xff] }
 0x1a6   :  { %4729 = vmatprep.subr.mxu0 %v4966_v14  ;;  %4740 = vmatprep.subr.mxu1 %v4966_v14 }
 0x1a7   :  { %4730 = vmatpush3.msra.mxu0 %v1432_v61  ;;  %4741 = vmatpush3.msra.mxu1 %v1436_v62 }
 0x1a8   :  { %4731 = vmatprep.subr.mxu0 %v4966_v14  ;;  %4742 = vmatprep.subr.mxu1 %v4966_v14 }
 0x1a9   :  { %4732 = vmatpush3.msra.mxu0 %v1431_v63  ;;  %4733 = vmatprep.mubr.msk.f32.mxu0 %vm4967_vm1, %v4966_v14 }
 0x1aa   :  { %4743 = vmatpush3.msra.mxu1 %v1435_v0  ;;  %4744 = vmatprep.mubr.msk.f32.mxu1 %vm4967_vm1, %v4966_v14 }
 0x1ab   :  { %4734 = vmatmul.mubr.msk.f32.vlgmr.msra.gmra.mxu0 %vm61_vm0, %v5196_v54  ;;  %4745 = vmatmul.mubr.msk.f32.vlgmr.msra.gmra.mxu1 %vm61_vm0, %v5196_v54 }
 0x1ac   :  { %4747 = vmatprep.subr.mxu0 %v4966_v14  ;;  %4749 = vmatprep.mubr.msk.f32.mxu0 %vm4967_vm1, %v4966_v14 }
 0x1ad   :  { %4762 = vmatprep.subr.mxu1 %v4966_v14  ;;  %4764 = vmatprep.mubr.msk.f32.mxu1 %vm4967_vm1, %v4966_v14 }
 0x1fe   :  { %v262_v1 = vpop.f32.mrf.mxu0  ;;  %v332_v2 = vpop.f32.mrf.mxu1 }
 0x1ff   :  { %v263_v25 = vadd.f32 %v4210_v20, %v262_v1  ;;  %v333_v28 = vadd.f32 %v4211_v26, %v332_v2  ;;  %v4242_v2 = vld [vmem:[%s5914_s6] ss:$0 sm:$0xff] }
 0x200   :  { %v4493_v3 = vpop.f32.mrf.mxu0  ;;  %v4504_v4 = vpop.f32.mrf.mxu1 }
 0x201   :  { %v4243_v3 = vld [vmem:[%s5914_s6 + $0x1] ss:$0 sm:$0xff] }
 0x207   :  { %v402_v5 = vpop.f32.mrf.mxu0  ;;  %v472_v6 = vpop.f32.mrf.mxu1 }
 0x208   :  { %v403_v40 = vadd.f32 %v4212_v33, %v402_v5  ;;  %v473_v41 = vadd.f32 %v4213_v35, %v472_v6 }
 0x209   :  { %v4515_v7 = vpop.f32.mrf.mxu0  ;;  %v4526_v8 = vpop.f32.mrf.mxu1 }
 0x211   :  { %v545_v9 = vpop.f32.mrf.mxu0  ;;  %v615_v54 = vpop.f32.mrf.mxu1 }
 0x212   :  { %v546_v52 = vadd.f32 %v4214_v46, %v545_v9  ;;  %v616_v34 = vadd.f32 %v4215_v47, %v615_v54 }
 0x213   :  { %v4537_v10 = vpop.f32.mrf.mxu0  ;;  %v4548_v11 = vpop.f32.mrf.mxu1 }
 0x21b   :  { %v5572_v12 = vpop.f32.mrf.mxu0  ;;  %v5574_v13 = vpop.f32.mrf.mxu1 }
 0x21c   :  { %v686_v0 = vadd.f32 %v4216_v58, %v5572_v12  ;;  %v756_v1 = vadd.f32 %v4217_v59, %v5574_v13 }
 0x21d   :  { %v4559_v15 = vpop.f32.mrf.mxu0  ;;  %v4570_v16 = vpop.f32.mrf.mxu1 }
 0x225   :  { %v913_v18 = vpop.f32.mrf.mxu0  ;;  %v983_v19 = vpop.f32.mrf.mxu1 }
 0x226   :  { %v914_v21 = vadd.f32 %v4226_v17, %v913_v18  ;;  %v984_v27 = vadd.f32 %v4227_v22, %v983_v19 }
 0x227   :  { %v4581_v23 = vpop.f32.mrf.mxu0  ;;  %v4592_v24 = vpop.f32.mrf.mxu1 }
 0x228   :  { %4748 = vmatpush3.xpose.msk.msra.mxu0 %vm2055_vm2, %v914_v21 }
 0x229   :  { %4752 = vmatprep.subr.mxu0 %v4966_v14 }
 0x22b   :  { %4750 = vmatmul.mubr.msk.f32.vlgmr.msra.gmra.mxu0 %vm2055_vm2, %v263_v25 }
 0x22c   :  { %4753 = vmatpush3.xpose.msk.msra.mxu0 %vm2055_vm2, %v984_v27  ;;  %4754 = vmatprep.mubr.msk.f32.mxu0 %vm4967_vm1, %v4966_v14 }
 0x22d   :  { %4757 = vmatprep.subr.mxu0 %v4966_v14 }
 0x22f   :  { %v1053_v31 = vpop.f32.mrf.mxu0  ;;  %v1123_v32 = vpop.f32.mrf.mxu1  ;;  %4755 = vmatmul.mubr.msk.f32.vlgmr.msra.gmra.mxu0 %vm2055_vm2, %v333_v28 }
 0x230   :  { %v1054_v36 = vadd.f32 %v4228_v29, %v1053_v31  ;;  %v1124_v37 = vadd.f32 %v4229_v30, %v1123_v32  ;;  %4759 = vmatprep.mubr.msk.f32.mxu0 %vm4967_vm1, %v4966_v14 }
 0x231   :  { %v4603_v38 = vpop.f32.mrf.mxu0  ;;  %v4614_v39 = vpop.f32.mrf.mxu1 }
 0x232   :  { %4758 = vmatpush3.xpose.msk.msra.mxu0 %vm2055_vm2, %v1054_v36  ;;  %4763 = vmatpush3.xpose.msk.msra.mxu1 %vm2055_vm2, %v1124_v37 }
 0x233   :  { %4767 = vmatprep.subr.mxu0 %v4966_v14  ;;  %4772 = vmatprep.subr.mxu1 %v4966_v14 }
 0x235   :  { %4760 = vmatmul.mubr.msk.f32.vlgmr.msra.gmra.mxu0 %vm2055_vm2, %v403_v40  ;;  %4765 = vmatmul.mubr.msk.f32.vlgmr.msra.gmra.mxu1 %vm2055_vm2, %v473_v41 }
 0x236   :  { %4769 = vmatprep.mubr.msk.f32.mxu0 %vm4967_vm1, %v4966_v14  ;;  %4774 = vmatprep.mubr.msk.f32.mxu1 %vm4967_vm1, %v4966_v14 }
 0x239   :  { %v1193_v44 = vpop.f32.mrf.mxu0  ;;  %v1263_v45 = vpop.f32.mrf.mxu1 }
 0x23a   :  { %v1194_v48 = vadd.f32 %v4230_v42, %v1193_v44  ;;  %v1264_v49 = vadd.f32 %v4231_v43, %v1263_v45 }
 0x23b   :  { %v4625_v50 = vpop.f32.mrf.mxu0  ;;  %v4636_v51 = vpop.f32.mrf.mxu1 }
 0x23c   :  { %4768 = vmatpush3.xpose.msk.msra.mxu0 %vm2055_vm2, %v1194_v48  ;;  %4773 = vmatpush3.xpose.msk.msra.mxu1 %vm2055_vm2, %v1264_v49 }
 0x23d   :  { %4777 = vmatprep.subr.mxu0 %v4966_v14  ;;  %4782 = vmatprep.subr.mxu1 %v4966_v14 }
 0x23f   :  { %4770 = vmatmul.mubr.msk.f32.vlgmr.msra.gmra.mxu0 %vm2055_vm2, %v546_v52  ;;  %4775 = vmatmul.mubr.msk.f32.vlgmr.msra.gmra.mxu1 %vm2055_vm2, %v616_v34 }
 0x240   :  { %4779 = vmatprep.mubr.msk.f32.mxu0 %vm4967_vm1, %v4966_v14  ;;  %4784 = vmatprep.mubr.msk.f32.mxu1 %vm4967_vm1, %v4966_v14 }
 0x243   :  { %v1333_v56 = vpop.f32.mrf.mxu0  ;;  %v1403_v57 = vpop.f32.mrf.mxu1 }
 0x244   :  { %v1334_v60 = vadd.f32 %v4232_v53, %v1333_v56  ;;  %v1404_v61 = vadd.f32 %v4233_v55, %v1403_v57 }
 0x245   :  { %v4647_v62 = vpop.f32.mrf.mxu0  ;;  %v4658_v63 = vpop.f32.mrf.mxu1 }
 0x246   :  { %4778 = vmatpush3.xpose.msk.msra.mxu0 %vm2055_vm2, %v1334_v60  ;;  %4783 = vmatpush3.xpose.msk.msra.mxu1 %vm2055_vm2, %v1404_v61 }
 0x247   :  { %4787 = vmatprep.subr.mxu0 %v4966_v14  ;;  %4792 = vmatprep.subr.mxu1 %v4966_v14 }
 0x249   :  { %4780 = vmatmul.mubr.msk.f32.vlgmr.msra.gmra.mxu0 %vm2055_vm2, %v686_v0  ;;  %4785 = vmatmul.mubr.msk.f32.vlgmr.msra.gmra.mxu1 %vm2055_vm2, %v756_v1 }
 0x24a   :  { %4789 = vmatprep.mubr.msk.f32.mxu0 %vm4967_vm1, %v4966_v14  ;;  %4794 = vmatprep.mubr.msk.f32.mxu1 %vm4967_vm1, %v4966_v14 }
 0x24d   :  { %v1561_v4 = vpop.f32.mrf.mxu0  ;;  %v1631_v5 = vpop.f32.mrf.mxu1 }
 0x24e   :  { %v1562_v6 = vadd.f32 %v4242_v2, %v1561_v4  ;;  %v1632_v7 = vadd.f32 %v4243_v3, %v1631_v5 }
 0x24f   :  { %v4669_v8 = vpop.f32.mrf.mxu0  ;;  %v4680_v9 = vpop.f32.mrf.mxu1 }
 0x250   :  { %4788 = vmatpush3.msra.mxu0 %v1562_v6  ;;  %4793 = vmatpush3.msra.mxu1 %v1632_v7 }
 0x251   :  { %4797 = vmatprep.subr.mxu0 %v4966_v14  ;;  %4802 = vmatprep.subr.mxu1 %v4966_v14 }
 0x257   :  { %v5674_v54 = vpop.f32.mrf.mxu0  ;;  %v5676_v10 = vpop.f32.mrf.mxu1 }
 0x259   :  { %v4691_v11 = vpop.f32.mrf.mxu0  ;;  %v4702_v12 = vpop.f32.mrf.mxu1 }
 0x261   :  { %v5678_v13 = vpop.f32.mrf.mxu0  ;;  %v5680_v15 = vpop.f32.mrf.mxu1 }
 0x263   :  { %v4713_v16 = vpop.f32.mrf.mxu0  ;;  %v4724_v17 = vpop.f32.mrf.mxu1 }
 0x26b   :  { %v5682_v18 = vpop.f32.mrf.mxu0  ;;  %v5684_v19 = vpop.f32.mrf.mxu1 }
 0x26d   :  { %v4735_v20 = vpop.f32.mrf.mxu0  ;;  %v4746_v21 = vpop.f32.mrf.mxu1 }
 0x2eb   :  { %v2128_v22 = vpop.f32.mrf.mxu0 }
 0x2ec   :  { %v2664_v23 = vsel %vm2055_vm2, %v2128_v22, -inf }
 0x2ed   :  { %2665 = vmax.xlane.f32.xlu0 %v2664_v23  ;;  %v4751_v24 = vpop.f32.mrf.mxu0 }
 0x2ef   :  { %v2204_v25 = vpop.f32.mrf.mxu0 }
 0x2f0   :  { %v2667_v26 = vsel %vm2055_vm2, %v2204_v25, -inf }
 0x2f1   :  { %2668 = vmax.xlane.f32.xlu1 %v2667_v26  ;;  %v4756_v27 = vpop.f32.mrf.mxu0 }
 0x2f5   :  { %v2280_v28 = vpop.f32.mrf.mxu0  ;;  %v2356_v29 = vpop.f32.mrf.mxu1 }
 0x2f6   :  { %v2673_v30 = vsel %vm2055_vm2, %v2356_v29, -inf  ;;  %v2670_v31 = vsel %vm2055_vm2, %v2280_v28, -inf }
 0x2f7   :  { %v4766_v32 = vpop.f32.mrf.mxu1  ;;  %2674 = vmax.xlane.f32.xlu1 %v2673_v30  ;;  %2671 = vmax.xlane.f32.xlu0 %v2670_v31  ;;  %v4761_v33 = vpop.f32.mrf.mxu0 }
 0x2f8   :  { %v4244_v33 = vld [vmem:[%s5914_s6 + $0x2] ss:$0 sm:$0xff] }
 0x2ff   :  { %v2432_v35 = vpop.f32.mrf.mxu0  ;;  %v2508_v36 = vpop.f32.mrf.mxu1 }
 0x300   :  { %v2679_v37 = vsel %vm2055_vm2, %v2508_v36, -inf  ;;  %v2676_v38 = vsel %vm2055_vm2, %v2432_v35, -inf }
 0x301   :  { %v4776_v39 = vpop.f32.mrf.mxu1  ;;  %2680 = vmax.xlane.f32.xlu1 %v2679_v37  ;;  %2677 = vmax.xlane.f32.xlu0 %v2676_v38  ;;  %v4771_v40 = vpop.f32.mrf.mxu0  ;;  %v1702_v37 = vadd.f32 %v4244_v33, %v5674_v54  ;;  %v4245_v38 = vld [vmem:[%s5914_s6 + $0x3] ss:$0 sm:$0xff]  ;;  %v4247_v54 = vld [vmem:[%s5914_s6 + $0x5] ss:$0 sm:$0xff] }
 0x309   :  { %v2584_v41 = vpop.f32.mrf.mxu0  ;;  %v2660_v42 = vpop.f32.mrf.mxu1 }
 0x30a   :  { %v2685_v43 = vsel %vm2055_vm2, %v2660_v42, -inf  ;;  %v2682_v44 = vsel %vm2055_vm2, %v2584_v41, -inf }
 0x30b   :  { %v4786_v45 = vpop.f32.mrf.mxu1  ;;  %2686 = vmax.xlane.f32.xlu1 %v2685_v43  ;;  %2683 = vmax.xlane.f32.xlu0 %v2682_v44  ;;  %v4781_v46 = vpop.f32.mrf.mxu0 }
 0x376   :  { %v2666_v47 = vpop.xlane.xlu0 %2665 }
 0x377   :  { %v2688_v48 = vsub.f32 %v2128_v22, %v2666_v47  ;;  %v1912_v47 = vadd.f32 %v4247_v54, %v5680_v15 }
 0x379   :  { %v2696_v49 = vmul.f32 1.442695, %v2688_v48 }
 0x37a   :  { %v2669_v50 = vpop.xlane.xlu1 %2668 }
 0x37b   :  { %4906 = vpow2.f32 %v2696_v49  ;;  %v2689_v51 = vsub.f32 %v2204_v25, %v2669_v50 }
 0x37d   :  { %v2698_v52 = vmul.f32 1.442695, %v2689_v51 }
 0x37f   :  { %4908 = vpow2.f32 %v2698_v52  ;;  %v4248_v52 = vld [vmem:[%s5914_s6 + $0x6] ss:$0 sm:$0xff] }
 0x380   :  { %v2675_v34 = vpop.xlane.xlu1 %2674  ;;  %v2672_v53 = vpop.xlane.xlu0 %2671 }
 0x381   :  { %v2691_v55 = vsub.f32 %v2356_v29, %v2675_v34  ;;  %v2690_v56 = vsub.f32 %v2280_v28, %v2672_v53 }
 0x383   :  { %v2702_v57 = vmul.f32 1.442695, %v2691_v55  ;;  %v2700_v58 = vmul.f32 1.442695, %v2690_v56 }
 0x385   :  { %4910 = vpow2.f32 %v2702_v57  ;;  %v1982_v57 = vadd.f32 %v4248_v52, %v5682_v18 }
 0x386   :  { %4912 = vpow2.f32 %v2700_v58 }
 0x388   :  { %v4907_v59 = vpop.eup %4906 }
 0x389   :  { %v2712_v60 = vsel %vm2055_vm2, %v4907_v59, 0.0 }
 0x38a   :  { %v2681_v61 = vpop.xlane.xlu1 %2680  ;;  %v2678_v62 = vpop.xlane.xlu0 %2677  ;;  %2713 = vadd.xlane.f32.xlu0 %v2712_v60  ;;  %v3336_v60 = vld [vmem:[%s5915_s7] sm:$0xff] }
 0x38b   :  { %v2693_v63 = vsub.f32 %v2508_v36, %v2681_v61  ;;  %v2692_v0 = vsub.f32 %v2432_v35, %v2678_v62  ;;  %v3337_v61 = vld [vmem:[%s5915_s7 + $0x8] sm:$0xff]  ;;  %v3338_v62 = vld [vmem:[%s5915_s7 + $0x10] sm:$0xff] }
 0x38c   :  { %v4909_v1 = vpop.eup %4908 }
 0x38d   :  { %v2706_v2 = vmul.f32 1.442695, %v2693_v63  ;;  %v2704_v3 = vmul.f32 1.442695, %v2692_v0  ;;  %v2715_v4 = vsel %vm2055_vm2, %v4909_v1, 0.0 }
 0x38e   :  { %2716 = vadd.xlane.f32.xlu1 %v2715_v4  ;;  %v3341_v4 = vld [vmem:[%s5915_s7 + $0x28] sm:$0xff] }
 0x38f   :  { %4914 = vpow2.f32 %v2706_v2 }
 0x390   :  { %4916 = vpow2.f32 %v2704_v3 }
 0x392   :  { %v4911_v5 = vpop.eup %4910 }
 0x393   :  { %v4913_v6 = vpop.eup %4912  ;;  %v2721_v7 = vsel %vm2055_vm2, %v4911_v5, 0.0 }
 0x394   :  { %v2687_v8 = vpop.xlane.xlu1 %2686  ;;  %v2684_v9 = vpop.xlane.xlu0 %2683  ;;  %2722 = vadd.xlane.f32.xlu1 %v2721_v7  ;;  %v2718_v11 = vsel %vm2055_vm2, %v4913_v6, 0.0 }
 0x395   :  { %v2695_v12 = vsub.f32 %v2660_v42, %v2687_v8  ;;  %v2694_v16 = vsub.f32 %v2584_v41, %v2684_v9  ;;  %2719 = vadd.xlane.f32.xlu0 %v2718_v11  ;;  %v1772_v41 = vadd.f32 %v4245_v38, %v5676_v10  ;;  %v4246_v10 = vld [vmem:[%s5914_s6 + $0x4] ss:$0 sm:$0xff]  ;;  %v3343_v11 = vld [vmem:[%s5915_s7 + $0x38] sm:$0xff] }
 0x396   :  { %v1842_v49 = vadd.f32 %v4246_v10, %v5678_v13  ;;  %v4249_v13 = vld [vmem:[%s5914_s6 + $0x7] ss:$0 sm:$0xff] }
 0x397   :  { %v2710_v17 = vmul.f32 1.442695, %v2695_v12  ;;  %v2708_v20 = vmul.f32 1.442695, %v2694_v16  ;;  %v2052_v55 = vadd.f32 %v4249_v13, %v5684_v19  ;;  %v3342_v16 = vld [vmem:[%s5915_s7 + $0x30] sm:$0xff] }
 0x399   :  { %4918 = vpow2.f32 %v2710_v17 }
 0x39a   :  { %4920 = vpow2.f32 %v2708_v20 }
 0x39c   :  { %v5698_v21 = vpop.eup %4914 }
 0x39d   :  { %v5700_v22 = vpop.eup %4916  ;;  %v2727_v23 = vsel %vm2055_vm2, %v5698_v21, 0.0 }
 0x39e   :  { %2728 = vadd.xlane.f32.xlu1 %v2727_v23  ;;  %v2724_v24 = vsel %vm2055_vm2, %v5700_v22, 0.0 }
 0x39f   :  { %2725 = vadd.xlane.f32.xlu0 %v2724_v24 }
 0x3a6   :  { %v5706_v25 = vpop.eup %4918 }
 0x3a7   :  { %v5708_v26 = vpop.eup %4920  ;;  %v2733_v27 = vsel %vm2055_vm2, %v5706_v25, 0.0 }
 0x3a8   :  { %2734 = vadd.xlane.f32.xlu1 %v2733_v27  ;;  %v2730_v28 = vsel %vm2055_vm2, %v5708_v26, 0.0 }
 0x3a9   :  { %2731 = vadd.xlane.f32.xlu0 %v2730_v28 }
 0x413   :  { %v2714_v29 = vpop.xlane.xlu0 %2713 }
 0x414   :  { %4922 = vrcp.f32 %v2714_v29 }
 0x417   :  { %v2717_v30 = vpop.xlane.xlu1 %2716 }
 0x418   :  { %4924 = vrcp.f32 %v2717_v30 }
 0x41d   :  { %v2723_v31 = vpop.xlane.xlu1 %2722 }
 0x41e   :  { %4926 = vrcp.f32 %v2723_v31  ;;  %v2720_v32 = vpop.xlane.xlu0 %2719 }
 0x41f   :  { %4928 = vrcp.f32 %v2720_v32 }
 0x421   :  { %v4923_v35 = vpop.eup %4922 }
 0x422   :  { %v2744_v36 = vmul.f32 %v4923_v35, %v4907_v59 }
 0x424   :  { %4790 = vmatmul.mubr.msk.f32.vlgmr.msra.gmra.mxu0 %vm2055_vm2, %v2744_v36 }
 0x425   :  { %v4925_v39 = vpop.eup %4924  ;;  %4798 = vmatpush3.msra.mxu0 %v1702_v37  ;;  %4799 = vmatprep.mubr.msk.f32.mxu0 %vm4967_vm1, %v4966_v14 }
 0x426   :  { %v2745_v40 = vmul.f32 %v4925_v39, %v4909_v1  ;;  %4807 = vmatprep.subr.mxu0 %v4966_v14  ;;  %v3339_v1 = vld [vmem:[%s5915_s7 + $0x18] sm:$0xff] }
 0x427   :  { %v2729_v42 = vpop.xlane.xlu1 %2728 }
 0x428   :  { %4930 = vrcp.f32 %v2729_v42  ;;  %v2726_v43 = vpop.xlane.xlu0 %2725  ;;  %4795 = vmatmul.mubr.msk.f32.vlgmr.msra.gmra.mxu1 %vm2055_vm2, %v2745_v40  ;;  %v4290_v40 = vld [vmem:[%s5916_s8] ss:$0 sm:$0xff] }
 0x429   :  { %4932 = vrcp.f32 %v2726_v43  ;;  %4803 = vmatpush3.msra.mxu1 %v1772_v41  ;;  %4804 = vmatprep.mubr.msk.f32.mxu1 %vm4967_vm1, %v4966_v14  ;;  %v4942_v43 = vld [vmem:[%s5930_s26] sm:$0xff] }
 0x42a   :  { %4812 = vmatprep.subr.mxu1 %v4966_v14 }
 0x42b   :  { %v4927_v44 = vpop.eup %4926 }
 0x42c   :  { %v4929_v45 = vpop.eup %4928  ;;  %v2747_v46 = vmul.f32 %v4927_v44, %v4911_v5 }
 0x42d   :  { %v2746_v48 = vmul.f32 %v4929_v45, %v4913_v6  ;;  %v3340_v6 = vld [vmem:[%s5915_s7 + $0x20] sm:$0xff] }
 0x42e   :  { %4805 = vmatmul.mubr.msk.f32.vlgmr.msra.gmra.mxu1 %vm2055_vm2, %v2747_v46 }
 0x42f   :  { %4800 = vmatmul.mubr.msk.f32.vlgmr.msra.gmra.mxu0 %vm2055_vm2, %v2746_v48  ;;  %4813 = vmatpush3.msra.mxu1 %v1912_v47 }
 0x430   :  { %4808 = vmatpush3.msra.mxu0 %v1842_v49  ;;  %4809 = vmatprep.mubr.msk.f32.mxu0 %vm4967_vm1, %v4966_v14 }
 0x431   :  { %v2735_v50 = vpop.xlane.xlu1 %2734  ;;  %4814 = vmatprep.mubr.msk.f32.mxu1 %vm4967_vm1, %v4966_v14  ;;  %4817 = vmatprep.subr.mxu0 %v4966_v14 }
 0x432   :  { %4934 = vrcp.f32 %v2735_v50  ;;  %v2732_v15 = vpop.xlane.xlu0 %2731  ;;  %4822 = vmatprep.subr.mxu1 %v4966_v14 }
 0x433   :  { %4936 = vrcp.f32 %v2732_v15 }
 0x435   :  { %v4931_v51 = vpop.eup %4930 }
 0x436   :  { %v4933_v34 = vpop.eup %4932  ;;  %v2749_v53 = vmul.f32 %v4931_v51, %v5698_v21 }
 0x437   :  { %v2748_v56 = vmul.f32 %v4933_v34, %v5700_v22 }
 0x438   :  { %4815 = vmatmul.mubr.msk.f32.vlgmr.msra.gmra.mxu1 %vm2055_vm2, %v2749_v53 }
 0x439   :  { %4810 = vmatmul.mubr.msk.f32.vlgmr.msra.gmra.mxu0 %vm2055_vm2, %v2748_v56  ;;  %4823 = vmatpush3.msra.mxu1 %v2052_v55 }
 0x43a   :  { %4818 = vmatpush3.msra.mxu0 %v1982_v57  ;;  %4819 = vmatprep.mubr.msk.f32.mxu0 %vm4967_vm1, %v4966_v14 }
 0x43b   :  { %4824 = vmatprep.mubr.msk.f32.mxu1 %vm4967_vm1, %v4966_v14  ;;  %4827 = vmatprep.subr.mxu0 %v4966_v14 }
 0x43c   :  { %4832 = vmatprep.subr.mxu1 %v4966_v14 }
 0x43f   :  { %v4935_v19 = vpop.eup %4934 }
 0x440   :  { %v4937_v58 = vpop.eup %4936  ;;  %v2751_v18 = vmul.f32 %v4935_v19, %v5706_v25  ;;  %v4943_v19 = vld [vmem:[%s5930_s26 + $0x8] sm:$0xff] }
 0x441   :  { %v2750_v59 = vmul.f32 %v4937_v58, %v5708_v26 }
 0x442   :  { %4825 = vmatmul.mubr.msk.f32.vlgmr.msra.gmra.mxu1 %vm2055_vm2, %v2751_v18 }
 0x443   :  { %4820 = vmatmul.mubr.msk.f32.vlgmr.msra.gmra.mxu0 %vm2055_vm2, %v2750_v59  ;;  %4834 = vmatprep.mubr.msk.f32.mxu1 %vm4967_vm1, %v4966_v14 }
 0x444   :  { %4829 = vmatprep.mubr.msk.f32.mxu0 %vm4967_vm1, %v4966_v14  ;;  %4828 = vmatpush3.msra.mxu0 %v3336_v60 }
 0x445   :  { %4837 = vmatprep.subr.mxu0 %v4966_v14  ;;  %4833 = vmatpush3.msra.mxu1 %v3337_v61 }
 0x446   :  { %4842 = vmatprep.subr.mxu1 %v4966_v14 }
 0x4e4   :  { %v2821_v63 = vpop.f32.mrf.mxu0 }
 0x4e5   :  { %4830 = vmatmul.mubr.msk.f32.vlgmr.msra.gmra.mxu0 %vm2055_vm2, %v2821_v63 }
 0x4e6   :  { %v4791_v0 = vpop.f32.mrf.mxu0  ;;  %4838 = vmatpush3.msra.mxu0 %v3338_v62  ;;  %4839 = vmatprep.mubr.msk.f32.mxu0 %vm4967_vm1, %v4966_v14 }
 0x4e7   :  { %4847 = vmatprep.subr.mxu0 %v4966_v14 }
 0x4e8   :  { %v2894_v2 = vpop.f32.mrf.mxu1 }
 0x4e9   :  { %4835 = vmatmul.mubr.msk.f32.vlgmr.msra.gmra.mxu1 %vm2055_vm2, %v2894_v2 }
 0x4ea   :  { %v4796_v3 = vpop.f32.mrf.mxu1  ;;  %4843 = vmatpush3.msra.mxu1 %v3339_v1  ;;  %4844 = vmatprep.mubr.msk.f32.mxu1 %vm4967_vm1, %v4966_v14 }
 0x4eb   :  { %4852 = vmatprep.subr.mxu1 %v4966_v14 }
 0x4ee   :  { %v3040_v5 = vpop.f32.mrf.mxu1 }
 0x4ef   :  { %v2967_v7 = vpop.f32.mrf.mxu0  ;;  %4845 = vmatmul.mubr.msk.f32.vlgmr.msra.gmra.mxu1 %vm2055_vm2, %v3040_v5  ;;  %v4000_v5 = vld [vmem:[%s5917_s9 + $0x18] sm:$0xff] }
 0x4f0   :  { %4840 = vmatmul.mubr.msk.f32.vlgmr.msra.gmra.mxu0 %vm2055_vm2, %v2967_v7  ;;  %v4806_v8 = vpop.f32.mrf.mxu1  ;;  %4853 = vmatpush3.msra.mxu1 %v3341_v4  ;;  %v3998_v7 = vld [vmem:[%s5917_s9 + $0x8] sm:$0xff] }
 0x4f1   :  { %v4801_v9 = vpop.f32.mrf.mxu0  ;;  %4848 = vmatpush3.msra.mxu0 %v3340_v6  ;;  %4849 = vmatprep.mubr.msk.f32.mxu0 %vm4967_vm1, %v4966_v14  ;;  %v3999_v6 = vld [vmem:[%s5917_s9 + $0x10] sm:$0xff]  ;;  %v4098_v8 = vld [vmem:[%s5919_s11 + $0x38] sm:$0xff] }
 0x4f2   :  { %4854 = vmatprep.mubr.msk.f32.mxu1 %vm4967_vm1, %v4966_v14  ;;  %4857 = vmatprep.subr.mxu0 %v4966_v14  ;;  %v4097_v9 = vld [vmem:[%s5919_s11 + $0x30] sm:$0xff] }
 0x4f3   :  { %4862 = vmatprep.subr.mxu1 %v4966_v14 }
 0x4f8   :  { %v3186_v12 = vpop.f32.mrf.mxu1 }
 0x4f9   :  { %v3113_v17 = vpop.f32.mrf.mxu0  ;;  %4855 = vmatmul.mubr.msk.f32.vlgmr.msra.gmra.mxu1 %vm2055_vm2, %v3186_v12  ;;  %v4096_v12 = vld [vmem:[%s5919_s11 + $0x28] sm:$0xff] }
 0x4fa   :  { %4850 = vmatmul.mubr.msk.f32.vlgmr.msra.gmra.mxu0 %vm2055_vm2, %v3113_v17  ;;  %v4816_v20 = vpop.f32.mrf.mxu1  ;;  %4863 = vmatpush3.msra.mxu1 %v3343_v11  ;;  %v3997_v11 = vld [vmem:[%s5917_s9] sm:$0xff] }
 0x4fb   :  { %v4811_v21 = vpop.f32.mrf.mxu0  ;;  %4858 = vmatpush3.msra.mxu0 %v3342_v16  ;;  %4859 = vmatprep.mubr.msk.f32.mxu0 %vm4967_vm1, %v4966_v14  ;;  %v4095_v16 = vld [vmem:[%s5919_s11 + $0x20] sm:$0xff] }
 0x4fc   :  { %4864 = vmatprep.mubr.msk.f32.mxu1 %vm4967_vm1, %v4966_v14  ;;  %4867 = vmatprep.subr.mxu0 %v4000_v5 }
 0x4fd   :  { %4878 = vmatprep.subr.mxu1 %v4098_v8 }
 0x502   :  { %v3332_v22 = vpop.f32.mrf.mxu1 }
 0x503   :  { %v3259_v23 = vpop.f32.mrf.mxu0  ;;  %4865 = vmatmul.mubr.msk.f32.vlgmr.msra.gmra.mxu1 %vm2055_vm2, %v3332_v22 }
 0x504   :  { %4860 = vmatmul.mubr.msk.f32.vlgmr.msra.gmra.mxu0 %vm2055_vm2, %v3259_v23  ;;  %v4826_v24 = vpop.f32.mrf.mxu1  ;;  %4879 = vmatpush3.msra.mxu1 %v4098_v8  ;;  %v4291_v23 = vld [vmem:[%s5923_s15] ss:$0 sm:$0xff] }
 0x505   :  { %v4821_v25 = vpop.f32.mrf.mxu0  ;;  %4868 = vmatpush3.msra.mxu0 %v4000_v5  ;;  %4880 = vmatprep.subr.mxu1 %v4097_v9 }
 0x506   :  { %4869 = vmatprep.subr.mxu0 %v3999_v6  ;;  %4881 = vmatpush3.msra.mxu1 %v4097_v9 }
 0x507   :  { %4870 = vmatpush3.msra.mxu0 %v3999_v6  ;;  %4882 = vmatprep.subr.mxu1 %v4096_v12 }
 0x508   :  { %4871 = vmatprep.subr.mxu0 %v3998_v7  ;;  %4883 = vmatpush3.msra.mxu1 %v4096_v12 }
 0x509   :  { %4872 = vmatpush3.msra.mxu0 %v3998_v7  ;;  %4884 = vmatprep.subr.mxu1 %v4095_v16 }
 0x50a   :  { %4873 = vmatprep.subr.mxu0 %v3997_v11  ;;  %4885 = vmatpush3.msra.mxu1 %v4095_v16 }
 0x50b   :  { %4874 = vmatpush3.msra.mxu0 %v3997_v11 }
 0x5a5   :  { %v3413_v26 = vpop.f32.mrf.mxu0 }
 0x5a6   :  { %v3928_v31 = vsel %vm61_vm0, %v3413_v26, 0.0  ;;  %v4292_v26 = vld [vmem:[%s5924_s16] ss:$0 sm:$0xff] }
 0x5a7   :  { %v4831_v27 = vpop.f32.mrf.mxu0 }
 0x5a9   :  { %v3486_v28 = vpop.f32.mrf.mxu1 }
 0x5aa   :  { %v3929_v30 = vsel %vm61_vm0, %v3486_v28, 0.0 }
 0x5ab   :  { %v4836_v29 = vpop.f32.mrf.mxu1  ;;  %v3930_v33 = vadd.f32 %v3929_v30, %v3928_v31 }
 0x5af   :  { %v3632_v32 = vpop.f32.mrf.mxu1 }
 0x5b0   :  { %v3559_v35 = vpop.f32.mrf.mxu0  ;;  %v3933_v39 = vsel %vm61_vm0, %v3632_v32, 0.0 }
 0x5b1   :  { %v3931_v14 = vsel %vm61_vm0, %v3559_v35, 0.0  ;;  %v4846_v36 = vpop.f32.mrf.mxu1 }
 0x5b2   :  { %v3932_v37 = vadd.f32 %v3931_v14, %v3930_v33  ;;  %v4841_v38 = vpop.f32.mrf.mxu0  ;;  %v4094_v14 = vld [vmem:[%s5919_s11 + $0x18] sm:$0xff]  ;;  %v4093_v36 = vld [vmem:[%s5919_s11 + $0x10] sm:$0xff] }
 0x5b3   :  { %4886 = vmatprep.subr.mxu1 %v4094_v14  ;;  %v4091_v38 = vld [vmem:[%s5919_s11] sm:$0xff] }
 0x5b4   :  { %v3934_v41 = vadd.f32 %v3933_v39, %v3932_v37  ;;  %4887 = vmatpush3.msra.mxu1 %v4094_v14  ;;  %v4092_v37 = vld [vmem:[%s5919_s11 + $0x8] sm:$0xff]  ;;  %v4293_v39 = vld [vmem:[%s5918_s10] ss:$0 sm:$0xff]  ;;  %s4968_s11 = smov [#allocation2]  }
 0x5b5   :  { %4888 = vmatprep.subr.mxu1 %v4093_v36  ;;  %s4197_s29 = sshll.u32 %s4968_s11, 4  ;;  %s4198_s29 = int_to_ptr.vmem [resolvable:$true] %s4197_s29 }
 0x5b6   :  { %v3949_v42 = vadd.f32 %v4290_v40, %v3934_v41  ;;  %4889 = vmatpush3.msra.mxu1 %v4093_v36  ;;  %s4944_s10 = scalar_lea.vmem %s4198_s29, 256  ;;  %p4949_p1 = scmp.lt.s32.totalorder %s4198_s29, %s4198_s29 }
 0x5b7   :  { %4890 = vmatprep.subr.mxu1 %v4092_v37  ;;  %p4945_p0 = scmp.ne.s32.totalorder %s4198_s29, %s4944_s10  ;;  %p4950_p2 = scmp.lt.s32.totalorder %s4944_s10, %s4944_s10 }
 0x5b8   :  { %v5832_v54 = vadd.f32 %v4942_v43, %v3949_v42  ;;  %4891 = vmatpush3.msra.mxu1 %v4092_v37 }
 0x5b9   :  { %v3778_v44 = vpop.f32.mrf.mxu1  ;;  %4892 = vmatprep.subr.mxu1 %v4091_v38  ;;  %p4951_p3 = por %p4950_p2, %p4949_p1 }
 0x5ba   :  { %v3705_v10 = vpop.f32.mrf.mxu0  ;;  %v3955_v45 = vsel %vm61_vm0, %v5832_v54, 0.0  ;;  %v3936_v49 = vsel %vm61_vm0, %v3778_v44, 0.0  ;;  %4893 = vmatpush3.msra.mxu1 %v4091_v38 }
 0x5bb   :  { %v4856_v46 = vpop.f32.mrf.mxu1  ;;  %3956 = vadd.xlane.f32.xlu0 %v3955_v45  ;;  %v3935_v48 = vsel %vm61_vm0, %v3705_v10, 0.0  ;;  %v4296_v45 = vld [vmem:[%s5920_s12] ss:$0 sm:$0xff]  ;;  %p4952_p4 = pnand %p4951_p3, %p4945_p0 }
 0x5bc   :  { %v4851_v47 = vpop.f32.mrf.mxu0  ;;  %v3937_v15 = vadd.f32 %v3936_v49, %v3935_v48 }
 0x5c3   :  { %v3924_v50 = vpop.f32.mrf.mxu1 }
 0x5c4   :  { %v3851_v13 = vpop.f32.mrf.mxu0  ;;  %v3940_v55 = vsel %vm61_vm0, %v3924_v50, 0.0 }
 0x5c5   :  { %v3938_v51 = vsel %vm61_vm0, %v3851_v13, 0.0  ;;  %v4866_v52 = vpop.f32.mrf.mxu1 }
 0x5c6   :  { %v3939_v34 = vadd.f32 %v3938_v51, %v3937_v15  ;;  %v4861_v53 = vpop.f32.mrf.mxu0 }
 0x5c8   :  { %v3941_v56 = vadd.f32 %v3940_v55, %v3939_v34 }
 0x5ca   :  { %v3950_v57 = vadd.f32 %v4290_v40, %v3941_v56 }
 0x5cc   :  { %v5843_v58 = vadd.f32 %v4943_v19, %v3950_v57 }
 0x5ce   :  { %v3958_v18 = vsel %vm61_vm0, %v5843_v58, 0.0 }
 0x5cf   :  { %3959 = vadd.xlane.f32.xlu1 %v3958_v18 }
 0x644   :  { %v3957_v59 = vpop.xlane.xlu0 %3956 }
 0x645   :  { %v3961_v60 = vmul.f32 0.03125, %v3957_v59 }
 0x647   :  { %v3963_v61 = vsub.f32 %v5832_v54, %v3961_v60 }
 0x649   :  { %v3965_v62 = vmul.f32 %v3963_v61, %v3963_v61 }
 0x64b   :  { %v3967_v63 = vsel %vm61_vm0, %v3965_v62, 0.0 }
 0x64c   :  { %3968 = vadd.xlane.f32.xlu0 %v3967_v63 }
 0x658   :  { %v3960_v0 = vpop.xlane.xlu1 %3959 }
 0x659   :  { %v3962_v1 = vmul.f32 0.03125, %v3960_v0 }
 0x65b   :  { %v3964_v2 = vsub.f32 %v5843_v58, %v3962_v1 }
 0x65d   :  { %v3966_v3 = vmul.f32 %v3964_v2, %v3964_v2 }
 0x65f   :  { %v3970_v4 = vsel %vm61_vm0, %v3966_v3, 0.0 }
 0x660   :  { %3971 = vadd.xlane.f32.xlu1 %v3970_v4 }
 0x6d5   :  { %v3969_v17 = vpop.xlane.xlu0 %3968 }
 0x6d6   :  { %v3973_v20 = vmul.f32 0.03125, %v3969_v17 }
 0x6d8   :  { %v3975_v21 = vadd.f32 1e-05, %v3973_v20 }
 0x6da   :  { %4938 = vrsqrt.f32 %v3975_v21 }
 0x6e7   :  { %v4939_v22 = vpop.eup %4938 }
 0x6e8   :  { %v3979_v24 = vmul.f32 %v4939_v22, %v3963_v61 }
 0x6e9   :  { %v3972_v25 = vpop.xlane.xlu1 %3971 }
 0x6ea   :  { %v3974_v27 = vmul.f32 0.03125, %v3972_v25  ;;  %v3987_v28 = vmul.f32 %v4291_v23, %v3979_v24 }
 0x6ec   :  { %v3976_v29 = vadd.f32 1e-05, %v3974_v27  ;;  %v3995_v30 = vadd.f32 %v4292_v26, %v3987_v28 }
 0x6ee   :  { %4940 = vrsqrt.f32 %v3976_v29  ;;  %4875 = vmatprep.mubr.msk.f32.mxu0 %vm61_vm0, %v3995_v30 }
 0x6fb   :  { %v4941_v31 = vpop.eup %4940 }
 0x6fc   :  { %v3980_v32 = vmul.f32 %v4941_v31, %v3964_v2 }
 0x6fe   :  { %v3988_v33 = vmul.f32 %v4291_v23, %v3980_v32 }
 0x700   :  { %v3996_v35 = vadd.f32 %v4292_v26, %v3988_v33 }
 0x702   :  { %4876 = vmatmul.mubr.msk.f32.vlgmr.msra.gmra.mxu0 %vm61_vm0, %v3996_v35 }
 0x7c2   :  { %v4877_v40 = vpop.f32.mrf.mxu0 }
 0x7c3   :  { %v4086_v41 = vadd.f32 %v4877_v40, %v4293_v39 }
 0x7c4   :  { %v4080_v42 = vpop.f32.mrf.mxu0 }
 0x7c5   :  { %v4081_v43 = vadd.f32 %v4293_v39, %v4080_v42  ;;  %v4090_v10 = vmax.f32 %v4086_v41, 0.0 }
 0x7c7   :  { %v4089_v44 = vmax.f32 %v4081_v43, 0.0 }
 0x7c9   :  { %4894 = vmatprep.mubr.msk.f32.mxu1 %vm4106_vm3, %v4089_v44 }
 0x7ca   :  { %4895 = vmatmul.mubr.msk.f32.vlgmr.msra.gmra.mxu1 %vm4106_vm3, %v4090_v10 }
 0x88a   :  { %v4896_v46 = vpop.f32.mrf.mxu1 }
 0x88b   :  { %v4185_v47 = vadd.f32 %v4896_v46, %v4296_v45 }
 0x88c   :  { %v4179_v48 = vpop.f32.mrf.mxu1 }
 0x88d   :  { %v4189_v49 = vadd.f32 %v4185_v47, %v5843_v58  ;;  %v4180_v50 = vadd.f32 %v4296_v45, %v4179_v48 }
 0x88f   :  { %4191 = vst.msk [vmem:[#allocation2 + $0x8] sm:$0xff] %vm61_vm0, %v4189_v49  ;;  %v4188_v15 = vadd.f32 %v4180_v50, %v5832_v54 }
 0x891   :  { %4190 = vst.msk [vmem:[#allocation2] sm:$0xff] %vm61_vm0, %v4188_v15 }
 0x892   :  { %4955 = shalt.err (!%p4952_p4)
}
 0x893   :  { %s4969_s12 = smov 128   ;;  %s4970_s0 = smov 8  }
 0x894   :  { %4203 = dma.vmem_to_hbm [thread:$0]  %s4198_s29, 256, %s5925_s17, [#allocation3], %s4969_s12, %s4969_s12, %s4970_s0  }
 0x895   :  { %4964 = dma.done.wait [#allocation3], 256  }
 0x896   :  { %4965 = vsyncadd [#allocation3], 4294967040 }
 0x897   :  { %4207 = vsyncpa [#allocation3], 1 }

</bundles_post_ra>
